<compile_context>
chip_gen: v5e
topology: v5e:2x2
jax: 0.10.0
libtpu: 0.0.40
codegen_flags: <defaults>
</compile_context>

<pallas_src>
import jax
import jax.numpy as jnp
from jax.experimental import pallas as pl
from jax.experimental.pallas import tpu as pltpu


def _make_fused_upconv_kernel(H: int, W: int):
    """nearest_x2 upsample + 3x3 conv (padding=1), fully in VMEM per image."""
    Ho, Wo = 2 * H, 2 * W
    HW = Ho * Wo
    halo = 2 * Wo                 # zero halo on each end of the flat slab
    # Flat slab length = upsampled image + two halos (set in wrapper too).

    def kernel(x_ref, w_ref, e_ref, b_ref, o_ref, xs_ref):
        # x_ref : (C, H, W)      original (pre-upsample) image tile.
        # w_ref : (9, C, C)      per-tap (Cout, Cin) weights, tap = ky*3 + kx.
        # e_ref : (W, Wo)        0/1 nearest-x2 column-stretch matrix.
        # b_ref : (C, 1)         bias.
        # o_ref : (C, HW)        flattened output (lane dense, HW = Ho*Wo).
        # xs_ref: (C, Wflat)     scratch: flat upsampled image with zero halos.
        C = o_ref.shape[0]

        # ---- Fused nearest-x2 upsample (never touches HBM). ----------------
        xs_ref[...] = jnp.zeros(xs_ref.shape, xs_ref.dtype)   # zero the halos
        e = e_ref[...]
        for yi in range(H):                                    # static unroll
            srow = jnp.dot(x_ref[:, yi, :], e,
                           preferred_element_type=jnp.float32)  # (C, Wo)
            base = halo + (2 * yi) * Wo
            xs_ref[:, base:base + Wo] = srow                   # upsampled row 2y
            xs_ref[:, base + Wo:base + 2 * Wo] = srow          # upsampled row 2y+1

        # ---- 3x3 conv (padding=1) as 9 lane-shifted MXU taps. --------------
        # Column index of every output pixel; masks the dx = +/-1 taps that
        # would otherwise read the neighbouring row's edge pixel.
        col = jax.lax.broadcasted_iota(jnp.int32, (C, HW), 1) % Wo
        left_ok = col >= 1
        right_ok = col <= Wo - 2

        acc = jnp.zeros((C, HW), jnp.float32)
        for dy in (-1, 0, 1):
            for dx in (-1, 0, 1):
                start = halo + dy * Wo + dx            # static lane offset
                patch = xs_ref[:, start:start + HW]    # (C, HW)
                if dx == -1:
                    patch = jnp.where(left_ok, patch, 0.0)
                elif dx == 1:
                    patch = jnp.where(right_ok, patch, 0.0)
                t = (dy + 1) * 3 + (dx + 1)
                acc = acc + jnp.dot(w_ref[t], patch,
                                    preferred_element_type=jnp.float32)
        o_ref[...] = (acc + b_ref[...]).astype(o_ref.dtype)

    return kernel


@jax.jit
def upsample_forward(x_nchw, w_oihw, bias):
    """Equivalent of PyTorch Upsample.forward: conv3x3(nearest_upsample_x2(x))."""
    N, C, H, W = x_nchw.shape
    Ho, Wo = 2 * H, 2 * W
    HW = Ho * Wo
    halo = 2 * Wo
    Wflat = HW + 2 * halo

    # OIHW -> (tap, Cout, Cin): each tap is a ready-to-use (Cout, Cin) matrix.
    w_taps = jnp.transpose(w_oihw, (2, 3, 0, 1)).reshape(9, C, C)
    b2 = bias.reshape(C, 1)

    # Nearest-x2 column stretch matrix: E[k, 2k] = E[k, 2k+1] = 1.
    e = (jnp.arange(Wo)[None, :] // 2 == jnp.arange(W)[:, None]).astype(x_nchw.dtype)

    cost = pl.CostEstimate(
        flops=2 * N * (H * C * W * Wo + 9 * C * C * HW),
        transcendentals=0,
        bytes_accessed=4 * (N * C * H * W + 9 * C * C + W * Wo + C + N * C * HW),
    )

    out_flat = pl.pallas_call(
        _make_fused_upconv_kernel(H, W),
        out_shape=jax.ShapeDtypeStruct((N, C, HW), x_nchw.dtype),
        grid_spec=pltpu.PrefetchScalarGridSpec(
            num_scalar_prefetch=0,
            grid=(N,),
            in_specs=[
                pl.BlockSpec((None, C, H, W), lambda n: (n, 0, 0, 0)),
                pl.BlockSpec((9, C, C), lambda n: (0, 0, 0)),
                pl.BlockSpec((W, Wo), lambda n: (0, 0)),
                pl.BlockSpec((C, 1), lambda n: (0, 0)),
            ],
            out_specs=pl.BlockSpec((None, C, HW), lambda n: (n, 0, 0)),
            scratch_shapes=[pltpu.VMEM((C, Wflat), jnp.float32)],
        ),
        compiler_params=pltpu.CompilerParams(
            dimension_semantics=("parallel",),
        ),
        cost_estimate=cost,
    )(x_nchw, w_taps, e, b2)

    # (N, C, Ho*Wo) -> (N, C, Ho, Wo): contiguous reshape, no transpose.
    return out_flat.reshape(N, C, Ho, Wo)


def _reference(x_nchw, w_oihw, bias):
    N, C, H, W = x_nchw.shape
    up = jnp.broadcast_to(
        x_nchw[:, :, :, None, :, None], (N, C, H, 2, W, 2)
    ).reshape(N, C, 2 * H, 2 * W)
    out = jax.lax.conv_general_dilated(
        up, w_oihw, window_strides=(1, 1), padding="SAME",
        dimension_numbers=("NCHW", "OIHW", "NCHW"),
    )
    return out + bias[None, :, None, None]


if __name__ == "__main__":
    # Module: Upsample(dim=4); input NCHW (2, 4, 16, 16)
    dim = 4
    N, H, W = 2, 16, 16

    key = jax.random.PRNGKey(0)
    kx, kw, kb = jax.random.split(key, 3)

    x = jax.random.normal(kx, (N, dim, H, W), dtype=jnp.float32)

    # Deterministic Conv2d(dim, dim, 3) params (PyTorch-style uniform init).
    fan_in = dim * 3 * 3
    bound = 1.0 / (fan_in ** 0.5)
    w = jax.random.uniform(kw, (dim, dim, 3, 3), jnp.float32, -bound, bound)
    b = jax.random.uniform(kb, (dim,), jnp.float32, -bound, bound)

    out = upsample_forward(x, w, b)
    out = jax.block_until_ready(out)

    ref = _reference(x, w, b)
    assert out.shape == (N, dim, 2 * H, 2 * W)
    assert jnp.allclose(out, ref, atol=1e-4, rtol=1e-4)

    print("KERNEL_OK")
</pallas_src>

<mosaic_0001>
module attributes {stable_mosaic.version = 11 : i64} {
  func.func @kernel(%arg0: i32, %arg1: memref<1x4x16x16xf32, #tpu.memory_space<vmem>>, %arg2: memref<9x4x4xf32, #tpu.memory_space<vmem>>, %arg3: memref<16x32xf32, #tpu.memory_space<vmem>>, %arg4: memref<4x1xf32, #tpu.memory_space<vmem>>, %arg5: memref<1x4x1024xf32, #tpu.memory_space<vmem>>, %arg6: memref<4x1152xf32, #tpu.memory_space<vmem>>) attributes {dimension_semantics = [#tpu.dimension_semantics<parallel>], iteration_bounds = array<i64: 2>, scalar_prefetch = 0 : i64, scratch_operands = 1 : i64, tpu.core_type = #tpu.core_type<tc>, window_params = [{transform_indices = @transform_0, window_bounds = array<i64: 1, 4, 16, 16>}, {pipeline_mode = #tpu.pipeline_mode<synchronous>, transform_indices = @transform_1, window_bounds = array<i64: 9, 4, 4>}, {pipeline_mode = #tpu.pipeline_mode<synchronous>, transform_indices = @transform_2, window_bounds = array<i64: 16, 32>}, {pipeline_mode = #tpu.pipeline_mode<synchronous>, transform_indices = @transform_3, window_bounds = array<i64: 4, 1>}, {transform_indices = @transform_4, window_bounds = array<i64: 1, 4, 1024>}]} {
    %cst = arith.constant 0.000000e+00 : f32
    %0 = vector.broadcast %cst : f32 to vector<4x1152xf32>
    %c0 = arith.constant 0 : index
    %c0_0 = arith.constant 0 : index
    %1 = vector.load %arg6[%c0, %c0_0] : memref<4x1152xf32, #tpu.memory_space<vmem>>, vector<4x1152xf32>
    tpu.vector_store %arg6[%c0, %c0_0], %0 {strides = array<i32>} : memref<4x1152xf32, #tpu.memory_space<vmem>>, vector<4x1152xf32>,
    %c0_1 = arith.constant 0 : index
    %c0_2 = arith.constant 0 : index
    %2 = vector.load %arg3[%c0_1, %c0_2] : memref<16x32xf32, #tpu.memory_space<vmem>>, vector<16x32xf32>
    %c0_3 = arith.constant 0 : index
    %c0_4 = arith.constant 0 : index
    %c0_5 = arith.constant 0 : index
    %c0_6 = arith.constant 0 : index
    %3 = vector.load %arg1[%c0_3, %c0_4, %c0_5, %c0_6] : memref<1x4x16x16xf32, #tpu.memory_space<vmem>>, vector<1x4x1x16xf32>
    %4 = vector.shape_cast %3 : vector<1x4x1x16xf32> to vector<4x16xf32>
    %cst_7 = arith.constant dense<0.000000e+00> : vector<4x32xf32>
    %5 = tpu.matmul %4, %2, %cst_7 {dimension_numbers = #tpu.dot_dimension_numbers<[1], [0], [0], [1], [0, 0, 1, 1], [], []>} : vector<4x16xf32>, vector<16x32xf32>, vector<4x32xf32> -> vector<4x32xf32>
    %c0_8 = arith.constant 0 : index
    %c64 = arith.constant 64 : index
    %6 = vector.load %arg6[%c0_8, %c64] : memref<4x1152xf32, #tpu.memory_space<vmem>>, vector<4x32xf32>
    tpu.vector_store %arg6[%c0_8, %c64], %5 {strides = array<i32>} : memref<4x1152xf32, #tpu.memory_space<vmem>>, vector<4x32xf32>,
    %c0_9 = arith.constant 0 : index
    %c96 = arith.constant 96 : index
    %7 = vector.load %arg6[%c0_9, %c96] : memref<4x1152xf32, #tpu.memory_space<vmem>>, vector<4x32xf32>
    tpu.vector_store %arg6[%c0_9, %c96], %5 {strides = array<i32>} : memref<4x1152xf32, #tpu.memory_space<vmem>>, vector<4x32xf32>,
    %c0_10 = arith.constant 0 : index
    %c0_11 = arith.constant 0 : index
    %c1 = arith.constant 1 : index
    %c0_12 = arith.constant 0 : index
    %8 = vector.load %arg1[%c0_10, %c0_11, %c1, %c0_12] : memref<1x4x16x16xf32, #tpu.memory_space<vmem>>, vector<1x4x1x16xf32>
    %9 = vector.shape_cast %8 : vector<1x4x1x16xf32> to vector<4x16xf32>
    %cst_13 = arith.constant dense<0.000000e+00> : vector<4x32xf32>
    %10 = tpu.matmul %9, %2, %cst_13 {dimension_numbers = #tpu.dot_dimension_numbers<[1], [0], [0], [1], [0, 0, 1, 1], [], []>} : vector<4x16xf32>, vector<16x32xf32>, vector<4x32xf32> -> vector<4x32xf32>
    %c0_14 = arith.constant 0 : index
    %c128 = arith.constant 128 : index
    %11 = vector.load %arg6[%c0_14, %c128] : memref<4x1152xf32, #tpu.memory_space<vmem>>, vector<4x32xf32>
    tpu.vector_store %arg6[%c0_14, %c128], %10 {strides = array<i32>} : memref<4x1152xf32, #tpu.memory_space<vmem>>, vector<4x32xf32>,
    %c0_15 = arith.constant 0 : index
    %c160 = arith.constant 160 : index
    %12 = vector.load %arg6[%c0_15, %c160] : memref<4x1152xf32, #tpu.memory_space<vmem>>, vector<4x32xf32>
    tpu.vector_store %arg6[%c0_15, %c160], %10 {strides = array<i32>} : memref<4x1152xf32, #tpu.memory_space<vmem>>, vector<4x32xf32>,
    %c0_16 = arith.constant 0 : index
    %c0_17 = arith.constant 0 : index
    %c2 = arith.constant 2 : index
    %c0_18 = arith.constant 0 : index
    %13 = vector.load %arg1[%c0_16, %c0_17, %c2, %c0_18] : memref<1x4x16x16xf32, #tpu.memory_space<vmem>>, vector<1x4x1x16xf32>
    %14 = vector.shape_cast %13 : vector<1x4x1x16xf32> to vector<4x16xf32>
    %cst_19 = arith.constant dense<0.000000e+00> : vector<4x32xf32>
    %15 = tpu.matmul %14, %2, %cst_19 {dimension_numbers = #tpu.dot_dimension_numbers<[1], [0], [0], [1], [0, 0, 1, 1], [], []>} : vector<4x16xf32>, vector<16x32xf32>, vector<4x32xf32> -> vector<4x32xf32>
    %c0_20 = arith.constant 0 : index
    %c192 = arith.constant 192 : index
    %16 = vector.load %arg6[%c0_20, %c192] : memref<4x1152xf32, #tpu.memory_space<vmem>>, vector<4x32xf32>
    tpu.vector_store %arg6[%c0_20, %c192], %15 {strides = array<i32>} : memref<4x1152xf32, #tpu.memory_space<vmem>>, vector<4x32xf32>,
    %c0_21 = arith.constant 0 : index
    %c224 = arith.constant 224 : index
    %17 = vector.load %arg6[%c0_21, %c224] : memref<4x1152xf32, #tpu.memory_space<vmem>>, vector<4x32xf32>
    tpu.vector_store %arg6[%c0_21, %c224], %15 {strides = array<i32>} : memref<4x1152xf32, #tpu.memory_space<vmem>>, vector<4x32xf32>,
    %c0_22 = arith.constant 0 : index
    %c0_23 = arith.constant 0 : index
    %c3 = arith.constant 3 : index
    %c0_24 = arith.constant 0 : index
    %18 = vector.load %arg1[%c0_22, %c0_23, %c3, %c0_24] : memref<1x4x16x16xf32, #tpu.memory_space<vmem>>, vector<1x4x1x16xf32>
    %19 = vector.shape_cast %18 : vector<1x4x1x16xf32> to vector<4x16xf32>
    %cst_25 = arith.constant dense<0.000000e+00> : vector<4x32xf32>
    %20 = tpu.matmul %19, %2, %cst_25 {dimension_numbers = #tpu.dot_dimension_numbers<[1], [0], [0], [1], [0, 0, 1, 1], [], []>} : vector<4x16xf32>, vector<16x32xf32>, vector<4x32xf32> -> vector<4x32xf32>
    %c0_26 = arith.constant 0 : index
    %c256 = arith.constant 256 : index
    %21 = vector.load %arg6[%c0_26, %c256] : memref<4x1152xf32, #tpu.memory_space<vmem>>, vector<4x32xf32>
    tpu.vector_store %arg6[%c0_26, %c256], %20 {strides = array<i32>} : memref<4x1152xf32, #tpu.memory_space<vmem>>, vector<4x32xf32>,
    %c0_27 = arith.constant 0 : index
    %c288 = arith.constant 288 : index
    %22 = vector.load %arg6[%c0_27, %c288] : memref<4x1152xf32, #tpu.memory_space<vmem>>, vector<4x32xf32>
    tpu.vector_store %arg6[%c0_27, %c288], %20 {strides = array<i32>} : memref<4x1152xf32, #tpu.memory_space<vmem>>, vector<4x32xf32>,
    %c0_28 = arith.constant 0 : index
    %c0_29 = arith.constant 0 : index
    %c4 = arith.constant 4 : index
    %c0_30 = arith.constant 0 : index
    %23 = vector.load %arg1[%c0_28, %c0_29, %c4, %c0_30] : memref<1x4x16x16xf32, #tpu.memory_space<vmem>>, vector<1x4x1x16xf32>
    %24 = vector.shape_cast %23 : vector<1x4x1x16xf32> to vector<4x16xf32>
    %cst_31 = arith.constant dense<0.000000e+00> : vector<4x32xf32>
    %25 = tpu.matmul %24, %2, %cst_31 {dimension_numbers = #tpu.dot_dimension_numbers<[1], [0], [0], [1], [0, 0, 1, 1], [], []>} : vector<4x16xf32>, vector<16x32xf32>, vector<4x32xf32> -> vector<4x32xf32>
    %c0_32 = arith.constant 0 : index
    %c320 = arith.constant 320 : index
    %26 = vector.load %arg6[%c0_32, %c320] : memref<4x1152xf32, #tpu.memory_space<vmem>>, vector<4x32xf32>
    tpu.vector_store %arg6[%c0_32, %c320], %25 {strides = array<i32>} : memref<4x1152xf32, #tpu.memory_space<vmem>>, vector<4x32xf32>,
    %c0_33 = arith.constant 0 : index
    %c352 = arith.constant 352 : index
    %27 = vector.load %arg6[%c0_33, %c352] : memref<4x1152xf32, #tpu.memory_space<vmem>>, vector<4x32xf32>
    tpu.vector_store %arg6[%c0_33, %c352], %25 {strides = array<i32>} : memref<4x1152xf32, #tpu.memory_space<vmem>>, vector<4x32xf32>,
    %c0_34 = arith.constant 0 : index
    %c0_35 = arith.constant 0 : index
    %c5 = arith.constant 5 : index
    %c0_36 = arith.constant 0 : index
    %28 = vector.load %arg1[%c0_34, %c0_35, %c5, %c0_36] : memref<1x4x16x16xf32, #tpu.memory_space<vmem>>, vector<1x4x1x16xf32>
    %29 = vector.shape_cast %28 : vector<1x4x1x16xf32> to vector<4x16xf32>
    %cst_37 = arith.constant dense<0.000000e+00> : vector<4x32xf32>
    %30 = tpu.matmul %29, %2, %cst_37 {dimension_numbers = #tpu.dot_dimension_numbers<[1], [0], [0], [1], [0, 0, 1, 1], [], []>} : vector<4x16xf32>, vector<16x32xf32>, vector<4x32xf32> -> vector<4x32xf32>
    %c0_38 = arith.constant 0 : index
    %c384 = arith.constant 384 : index
    %31 = vector.load %arg6[%c0_38, %c384] : memref<4x1152xf32, #tpu.memory_space<vmem>>, vector<4x32xf32>
    tpu.vector_store %arg6[%c0_38, %c384], %30 {strides = array<i32>} : memref<4x1152xf32, #tpu.memory_space<vmem>>, vector<4x32xf32>,
    %c0_39 = arith.constant 0 : index
    %c416 = arith.constant 416 : index
    %32 = vector.load %arg6[%c0_39, %c416] : memref<4x1152xf32, #tpu.memory_space<vmem>>, vector<4x32xf32>
    tpu.vector_store %arg6[%c0_39, %c416], %30 {strides = array<i32>} : memref<4x1152xf32, #tpu.memory_space<vmem>>, vector<4x32xf32>,
    %c0_40 = arith.constant 0 : index
    %c0_41 = arith.constant 0 : index
    %c6 = arith.constant 6 : index
    %c0_42 = arith.constant 0 : index
    %33 = vector.load %arg1[%c0_40, %c0_41, %c6, %c0_42] : memref<1x4x16x16xf32, #tpu.memory_space<vmem>>, vector<1x4x1x16xf32>
    %34 = vector.shape_cast %33 : vector<1x4x1x16xf32> to vector<4x16xf32>
    %cst_43 = arith.constant dense<0.000000e+00> : vector<4x32xf32>
    %35 = tpu.matmul %34, %2, %cst_43 {dimension_numbers = #tpu.dot_dimension_numbers<[1], [0], [0], [1], [0, 0, 1, 1], [], []>} : vector<4x16xf32>, vector<16x32xf32>, vector<4x32xf32> -> vector<4x32xf32>
    %c0_44 = arith.constant 0 : index
    %c448 = arith.constant 448 : index
    %36 = vector.load %arg6[%c0_44, %c448] : memref<4x1152xf32, #tpu.memory_space<vmem>>, vector<4x32xf32>
    tpu.vector_store %arg6[%c0_44, %c448], %35 {strides = array<i32>} : memref<4x1152xf32, #tpu.memory_space<vmem>>, vector<4x32xf32>,
    %c0_45 = arith.constant 0 : index
    %c480 = arith.constant 480 : index
    %37 = vector.load %arg6[%c0_45, %c480] : memref<4x1152xf32, #tpu.memory_space<vmem>>, vector<4x32xf32>
    tpu.vector_store %arg6[%c0_45, %c480], %35 {strides = array<i32>} : memref<4x1152xf32, #tpu.memory_space<vmem>>, vector<4x32xf32>,
    %c0_46 = arith.constant 0 : index
    %c0_47 = arith.constant 0 : index
    %c7 = arith.constant 7 : index
    %c0_48 = arith.constant 0 : index
    %38 = vector.load %arg1[%c0_46, %c0_47, %c7, %c0_48] : memref<1x4x16x16xf32, #tpu.memory_space<vmem>>, vector<1x4x1x16xf32>
    %39 = vector.shape_cast %38 : vector<1x4x1x16xf32> to vector<4x16xf32>
    %cst_49 = arith.constant dense<0.000000e+00> : vector<4x32xf32>
    %40 = tpu.matmul %39, %2, %cst_49 {dimension_numbers = #tpu.dot_dimension_numbers<[1], [0], [0], [1], [0, 0, 1, 1], [], []>} : vector<4x16xf32>, vector<16x32xf32>, vector<4x32xf32> -> vector<4x32xf32>
    %c0_50 = arith.constant 0 : index
    %c512 = arith.constant 512 : index
    %41 = vector.load %arg6[%c0_50, %c512] : memref<4x1152xf32, #tpu.memory_space<vmem>>, vector<4x32xf32>
    tpu.vector_store %arg6[%c0_50, %c512], %40 {strides = array<i32>} : memref<4x1152xf32, #tpu.memory_space<vmem>>, vector<4x32xf32>,
    %c0_51 = arith.constant 0 : index
    %c544 = arith.constant 544 : index
    %42 = vector.load %arg6[%c0_51, %c544] : memref<4x1152xf32, #tpu.memory_space<vmem>>, vector<4x32xf32>
    tpu.vector_store %arg6[%c0_51, %c544], %40 {strides = array<i32>} : memref<4x1152xf32, #tpu.memory_space<vmem>>, vector<4x32xf32>,
    %c0_52 = arith.constant 0 : index
    %c0_53 = arith.constant 0 : index
    %c8 = arith.constant 8 : index
    %c0_54 = arith.constant 0 : index
    %43 = vector.load %arg1[%c0_52, %c0_53, %c8, %c0_54] : memref<1x4x16x16xf32, #tpu.memory_space<vmem>>, vector<1x4x1x16xf32>
    %44 = vector.shape_cast %43 : vector<1x4x1x16xf32> to vector<4x16xf32>
    %cst_55 = arith.constant dense<0.000000e+00> : vector<4x32xf32>
    %45 = tpu.matmul %44, %2, %cst_55 {dimension_numbers = #tpu.dot_dimension_numbers<[1], [0], [0], [1], [0, 0, 1, 1], [], []>} : vector<4x16xf32>, vector<16x32xf32>, vector<4x32xf32> -> vector<4x32xf32>
    %c0_56 = arith.constant 0 : index
    %c576 = arith.constant 576 : index
    %46 = vector.load %arg6[%c0_56, %c576] : memref<4x1152xf32, #tpu.memory_space<vmem>>, vector<4x32xf32>
    tpu.vector_store %arg6[%c0_56, %c576], %45 {strides = array<i32>} : memref<4x1152xf32, #tpu.memory_space<vmem>>, vector<4x32xf32>,
    %c0_57 = arith.constant 0 : index
    %c608 = arith.constant 608 : index
    %47 = vector.load %arg6[%c0_57, %c608] : memref<4x1152xf32, #tpu.memory_space<vmem>>, vector<4x32xf32>
    tpu.vector_store %arg6[%c0_57, %c608], %45 {strides = array<i32>} : memref<4x1152xf32, #tpu.memory_space<vmem>>, vector<4x32xf32>,
    %c0_58 = arith.constant 0 : index
    %c0_59 = arith.constant 0 : index
    %c9 = arith.constant 9 : index
    %c0_60 = arith.constant 0 : index
    %48 = vector.load %arg1[%c0_58, %c0_59, %c9, %c0_60] : memref<1x4x16x16xf32, #tpu.memory_space<vmem>>, vector<1x4x1x16xf32>
    %49 = vector.shape_cast %48 : vector<1x4x1x16xf32> to vector<4x16xf32>
    %cst_61 = arith.constant dense<0.000000e+00> : vector<4x32xf32>
    %50 = tpu.matmul %49, %2, %cst_61 {dimension_numbers = #tpu.dot_dimension_numbers<[1], [0], [0], [1], [0, 0, 1, 1], [], []>} : vector<4x16xf32>, vector<16x32xf32>, vector<4x32xf32> -> vector<4x32xf32>
    %c0_62 = arith.constant 0 : index
    %c640 = arith.constant 640 : index
    %51 = vector.load %arg6[%c0_62, %c640] : memref<4x1152xf32, #tpu.memory_space<vmem>>, vector<4x32xf32>
    tpu.vector_store %arg6[%c0_62, %c640], %50 {strides = array<i32>} : memref<4x1152xf32, #tpu.memory_space<vmem>>, vector<4x32xf32>,
    %c0_63 = arith.constant 0 : index
    %c672 = arith.constant 672 : index
    %52 = vector.load %arg6[%c0_63, %c672] : memref<4x1152xf32, #tpu.memory_space<vmem>>, vector<4x32xf32>
    tpu.vector_store %arg6[%c0_63, %c672], %50 {strides = array<i32>} : memref<4x1152xf32, #tpu.memory_space<vmem>>, vector<4x32xf32>,
    %c0_64 = arith.constant 0 : index
    %c0_65 = arith.constant 0 : index
    %c10 = arith.constant 10 : index
    %c0_66 = arith.constant 0 : index
    %53 = vector.load %arg1[%c0_64, %c0_65, %c10, %c0_66] : memref<1x4x16x16xf32, #tpu.memory_space<vmem>>, vector<1x4x1x16xf32>
    %54 = vector.shape_cast %53 : vector<1x4x1x16xf32> to vector<4x16xf32>
    %cst_67 = arith.constant dense<0.000000e+00> : vector<4x32xf32>
    %55 = tpu.matmul %54, %2, %cst_67 {dimension_numbers = #tpu.dot_dimension_numbers<[1], [0], [0], [1], [0, 0, 1, 1], [], []>} : vector<4x16xf32>, vector<16x32xf32>, vector<4x32xf32> -> vector<4x32xf32>
    %c0_68 = arith.constant 0 : index
    %c704 = arith.constant 704 : index
    %56 = vector.load %arg6[%c0_68, %c704] : memref<4x1152xf32, #tpu.memory_space<vmem>>, vector<4x32xf32>
    tpu.vector_store %arg6[%c0_68, %c704], %55 {strides = array<i32>} : memref<4x1152xf32, #tpu.memory_space<vmem>>, vector<4x32xf32>,
    %c0_69 = arith.constant 0 : index
    %c736 = arith.constant 736 : index
    %57 = vector.load %arg6[%c0_69, %c736] : memref<4x1152xf32, #tpu.memory_space<vmem>>, vector<4x32xf32>
    tpu.vector_store %arg6[%c0_69, %c736], %55 {strides = array<i32>} : memref<4x1152xf32, #tpu.memory_space<vmem>>, vector<4x32xf32>,
    %c0_70 = arith.constant 0 : index
    %c0_71 = arith.constant 0 : index
    %c11 = arith.constant 11 : index
    %c0_72 = arith.constant 0 : index
    %58 = vector.load %arg1[%c0_70, %c0_71, %c11, %c0_72] : memref<1x4x16x16xf32, #tpu.memory_space<vmem>>, vector<1x4x1x16xf32>
    %59 = vector.shape_cast %58 : vector<1x4x1x16xf32> to vector<4x16xf32>
    %cst_73 = arith.constant dense<0.000000e+00> : vector<4x32xf32>
    %60 = tpu.matmul %59, %2, %cst_73 {dimension_numbers = #tpu.dot_dimension_numbers<[1], [0], [0], [1], [0, 0, 1, 1], [], []>} : vector<4x16xf32>, vector<16x32xf32>, vector<4x32xf32> -> vector<4x32xf32>
    %c0_74 = arith.constant 0 : index
    %c768 = arith.constant 768 : index
    %61 = vector.load %arg6[%c0_74, %c768] : memref<4x1152xf32, #tpu.memory_space<vmem>>, vector<4x32xf32>
    tpu.vector_store %arg6[%c0_74, %c768], %60 {strides = array<i32>} : memref<4x1152xf32, #tpu.memory_space<vmem>>, vector<4x32xf32>,
    %c0_75 = arith.constant 0 : index
    %c800 = arith.constant 800 : index
    %62 = vector.load %arg6[%c0_75, %c800] : memref<4x1152xf32, #tpu.memory_space<vmem>>, vector<4x32xf32>
    tpu.vector_store %arg6[%c0_75, %c800], %60 {strides = array<i32>} : memref<4x1152xf32, #tpu.memory_space<vmem>>, vector<4x32xf32>,
    %c0_76 = arith.constant 0 : index
    %c0_77 = arith.constant 0 : index
    %c12 = arith.constant 12 : index
    %c0_78 = arith.constant 0 : index
    %63 = vector.load %arg1[%c0_76, %c0_77, %c12, %c0_78] : memref<1x4x16x16xf32, #tpu.memory_space<vmem>>, vector<1x4x1x16xf32>
    %64 = vector.shape_cast %63 : vector<1x4x1x16xf32> to vector<4x16xf32>
    %cst_79 = arith.constant dense<0.000000e+00> : vector<4x32xf32>
    %65 = tpu.matmul %64, %2, %cst_79 {dimension_numbers = #tpu.dot_dimension_numbers<[1], [0], [0], [1], [0, 0, 1, 1], [], []>} : vector<4x16xf32>, vector<16x32xf32>, vector<4x32xf32> -> vector<4x32xf32>
    %c0_80 = arith.constant 0 : index
    %c832 = arith.constant 832 : index
    %66 = vector.load %arg6[%c0_80, %c832] : memref<4x1152xf32, #tpu.memory_space<vmem>>, vector<4x32xf32>
    tpu.vector_store %arg6[%c0_80, %c832], %65 {strides = array<i32>} : memref<4x1152xf32, #tpu.memory_space<vmem>>, vector<4x32xf32>,
    %c0_81 = arith.constant 0 : index
    %c864 = arith.constant 864 : index
    %67 = vector.load %arg6[%c0_81, %c864] : memref<4x1152xf32, #tpu.memory_space<vmem>>, vector<4x32xf32>
    tpu.vector_store %arg6[%c0_81, %c864], %65 {strides = array<i32>} : memref<4x1152xf32, #tpu.memory_space<vmem>>, vector<4x32xf32>,
    %c0_82 = arith.constant 0 : index
    %c0_83 = arith.constant 0 : index
    %c13 = arith.constant 13 : index
    %c0_84 = arith.constant 0 : index
    %68 = vector.load %arg1[%c0_82, %c0_83, %c13, %c0_84] : memref<1x4x16x16xf32, #tpu.memory_space<vmem>>, vector<1x4x1x16xf32>
    %69 = vector.shape_cast %68 : vector<1x4x1x16xf32> to vector<4x16xf32>
    %cst_85 = arith.constant dense<0.000000e+00> : vector<4x32xf32>
    %70 = tpu.matmul %69, %2, %cst_85 {dimension_numbers = #tpu.dot_dimension_numbers<[1], [0], [0], [1], [0, 0, 1, 1], [], []>} : vector<4x16xf32>, vector<16x32xf32>, vector<4x32xf32> -> vector<4x32xf32>
    %c0_86 = arith.constant 0 : index
    %c896 = arith.constant 896 : index
    %71 = vector.load %arg6[%c0_86, %c896] : memref<4x1152xf32, #tpu.memory_space<vmem>>, vector<4x32xf32>
    tpu.vector_store %arg6[%c0_86, %c896], %70 {strides = array<i32>} : memref<4x1152xf32, #tpu.memory_space<vmem>>, vector<4x32xf32>,
    %c0_87 = arith.constant 0 : index
    %c928 = arith.constant 928 : index
    %72 = vector.load %arg6[%c0_87, %c928] : memref<4x1152xf32, #tpu.memory_space<vmem>>, vector<4x32xf32>
    tpu.vector_store %arg6[%c0_87, %c928], %70 {strides = array<i32>} : memref<4x1152xf32, #tpu.memory_space<vmem>>, vector<4x32xf32>,
    %c0_88 = arith.constant 0 : index
    %c0_89 = arith.constant 0 : index
    %c14 = arith.constant 14 : index
    %c0_90 = arith.constant 0 : index
    %73 = vector.load %arg1[%c0_88, %c0_89, %c14, %c0_90] : memref<1x4x16x16xf32, #tpu.memory_space<vmem>>, vector<1x4x1x16xf32>
    %74 = vector.shape_cast %73 : vector<1x4x1x16xf32> to vector<4x16xf32>
    %cst_91 = arith.constant dense<0.000000e+00> : vector<4x32xf32>
    %75 = tpu.matmul %74, %2, %cst_91 {dimension_numbers = #tpu.dot_dimension_numbers<[1], [0], [0], [1], [0, 0, 1, 1], [], []>} : vector<4x16xf32>, vector<16x32xf32>, vector<4x32xf32> -> vector<4x32xf32>
    %c0_92 = arith.constant 0 : index
    %c960 = arith.constant 960 : index
    %76 = vector.load %arg6[%c0_92, %c960] : memref<4x1152xf32, #tpu.memory_space<vmem>>, vector<4x32xf32>
    tpu.vector_store %arg6[%c0_92, %c960], %75 {strides = array<i32>} : memref<4x1152xf32, #tpu.memory_space<vmem>>, vector<4x32xf32>,
    %c0_93 = arith.constant 0 : index
    %c992 = arith.constant 992 : index
    %77 = vector.load %arg6[%c0_93, %c992] : memref<4x1152xf32, #tpu.memory_space<vmem>>, vector<4x32xf32>
    tpu.vector_store %arg6[%c0_93, %c992], %75 {strides = array<i32>} : memref<4x1152xf32, #tpu.memory_space<vmem>>, vector<4x32xf32>,
    %c0_94 = arith.constant 0 : index
    %c0_95 = arith.constant 0 : index
    %c15 = arith.constant 15 : index
    %c0_96 = arith.constant 0 : index
    %78 = vector.load %arg1[%c0_94, %c0_95, %c15, %c0_96] : memref<1x4x16x16xf32, #tpu.memory_space<vmem>>, vector<1x4x1x16xf32>
    %79 = vector.shape_cast %78 : vector<1x4x1x16xf32> to vector<4x16xf32>
    %cst_97 = arith.constant dense<0.000000e+00> : vector<4x32xf32>
    %80 = tpu.matmul %79, %2, %cst_97 {dimension_numbers = #tpu.dot_dimension_numbers<[1], [0], [0], [1], [0, 0, 1, 1], [], []>} : vector<4x16xf32>, vector<16x32xf32>, vector<4x32xf32> -> vector<4x32xf32>
    %c0_98 = arith.constant 0 : index
    %c1024 = arith.constant 1024 : index
    %81 = vector.load %arg6[%c0_98, %c1024] : memref<4x1152xf32, #tpu.memory_space<vmem>>, vector<4x32xf32>
    tpu.vector_store %arg6[%c0_98, %c1024], %80 {strides = array<i32>} : memref<4x1152xf32, #tpu.memory_space<vmem>>, vector<4x32xf32>,
    %c0_99 = arith.constant 0 : index
    %c1056 = arith.constant 1056 : index
    %82 = vector.load %arg6[%c0_99, %c1056] : memref<4x1152xf32, #tpu.memory_space<vmem>>, vector<4x32xf32>
    tpu.vector_store %arg6[%c0_99, %c1056], %80 {strides = array<i32>} : memref<4x1152xf32, #tpu.memory_space<vmem>>, vector<4x32xf32>,
    %83 = tpu.iota {dimensions = array<i32: 1>} : vector<4x1024xi32>
    %c32_i32 = arith.constant 32 : i32
    %c0_i32 = arith.constant 0 : i32
    %84 = arith.cmpi eq, %c32_i32, %c0_i32 : i32
    %c1_i32 = arith.constant 1 : i32
    %85 = arith.select %84, %c1_i32, %c32_i32 : i32
    %86 = vector.broadcast %85 : i32 to vector<4x1024xi32>
    %87 = arith.remsi %83, %86 : vector<4x1024xi32>
    %c0_i32_100 = arith.constant 0 : i32
    %88 = vector.broadcast %c0_i32_100 : i32 to vector<4x1024xi32>
    %89 = arith.cmpi ne, %87, %88 : vector<4x1024xi32>
    %c0_i32_101 = arith.constant 0 : i32
    %90 = vector.broadcast %c0_i32_101 : i32 to vector<4x1024xi32>
    %91 = arith.cmpi slt, %87, %90 : vector<4x1024xi32>
    %c0_i32_102 = arith.constant 0 : i32
    %92 = arith.cmpi slt, %85, %c0_i32_102 : i32
    %93 = vector.broadcast %92 : i1 to vector<4x1024xi1>
    %94 = vector.broadcast %93 : vector<4x1024xi1> to vector<4x1024xi1>
    %95 = arith.xori %91, %94 : vector<4x1024xi1>
    %96 = arith.andi %95, %89 : vector<4x1024xi1>
    %97 = vector.broadcast %85 : i32 to vector<4x1024xi32>
    %98 = arith.addi %87, %97 : vector<4x1024xi32>
    %99 = arith.select %96, %98, %87 : vector<4x1024xi1>, vector<4x1024xi32>
    %c1_i32_103 = arith.constant 1 : i32
    %100 = vector.broadcast %c1_i32_103 : i32 to vector<4x1024xi32>
    %101 = arith.cmpi sge, %99, %100 : vector<4x1024xi32>
    %c30_i32 = arith.constant 30 : i32
    %102 = vector.broadcast %c30_i32 : i32 to vector<4x1024xi32>
    %103 = arith.cmpi sle, %99, %102 : vector<4x1024xi32>
    %cst_104 = arith.constant 0.000000e+00 : f32
    %104 = vector.broadcast %cst_104 : f32 to vector<4x1024xf32>
    %c0_105 = arith.constant 0 : index
    %c31 = arith.constant 31 : index
    %105 = vector.load %arg6[%c0_105, %c31] : memref<4x1152xf32, #tpu.memory_space<vmem>>, vector<4x1024xf32>
    %cst_106 = arith.constant 0.000000e+00 : f32
    %106 = vector.broadcast %cst_106 : f32 to vector<4x1024xf32>
    %107 = arith.select %101, %105, %106 : vector<4x1024xi1>, vector<4x1024xf32>
    %c0_107 = arith.constant 0 : index
    %c0_108 = arith.constant 0 : index
    %c0_109 = arith.constant 0 : index
    %108 = vector.load %arg2[%c0_107, %c0_108, %c0_109] : memref<9x4x4xf32, #tpu.memory_space<vmem>>, vector<1x4x4xf32>
    %109 = vector.shape_cast %108 : vector<1x4x4xf32> to vector<4x4xf32>
    %cst_110 = arith.constant dense<0.000000e+00> : vector<4x1024xf32>
    %110 = tpu.matmul %109, %107, %cst_110 {dimension_numbers = #tpu.dot_dimension_numbers<[1], [0], [0], [1], [0, 0, 1, 1], [], []>} : vector<4x4xf32>, vector<4x1024xf32>, vector<4x1024xf32> -> vector<4x1024xf32>
    %111 = arith.addf %104, %110 : vector<4x1024xf32>
    %c0_111 = arith.constant 0 : index
    %c32 = arith.constant 32 : index
    %112 = vector.load %arg6[%c0_111, %c32] : memref<4x1152xf32, #tpu.memory_space<vmem>>, vector<4x1024xf32>
    %c1_112 = arith.constant 1 : index
    %c0_113 = arith.constant 0 : index
    %c0_114 = arith.constant 0 : index
    %113 = vector.load %arg2[%c1_112, %c0_113, %c0_114] : memref<9x4x4xf32, #tpu.memory_space<vmem>>, vector<1x4x4xf32>
    %114 = vector.shape_cast %113 : vector<1x4x4xf32> to vector<4x4xf32>
    %cst_115 = arith.constant dense<0.000000e+00> : vector<4x1024xf32>
    %115 = tpu.matmul %114, %112, %cst_115 {dimension_numbers = #tpu.dot_dimension_numbers<[1], [0], [0], [1], [0, 0, 1, 1], [], []>} : vector<4x4xf32>, vector<4x1024xf32>, vector<4x1024xf32> -> vector<4x1024xf32>
    %116 = arith.addf %111, %115 : vector<4x1024xf32>
    %c0_116 = arith.constant 0 : index
    %c33 = arith.constant 33 : index
    %117 = vector.load %arg6[%c0_116, %c33] : memref<4x1152xf32, #tpu.memory_space<vmem>>, vector<4x1024xf32>
    %cst_117 = arith.constant 0.000000e+00 : f32
    %118 = vector.broadcast %cst_117 : f32 to vector<4x1024xf32>
    %119 = arith.select %103, %117, %118 : vector<4x1024xi1>, vector<4x1024xf32>
    %c2_118 = arith.constant 2 : index
    %c0_119 = arith.constant 0 : index
    %c0_120 = arith.constant 0 : index
    %120 = vector.load %arg2[%c2_118, %c0_119, %c0_120] : memref<9x4x4xf32, #tpu.memory_space<vmem>>, vector<1x4x4xf32>
    %121 = vector.shape_cast %120 : vector<1x4x4xf32> to vector<4x4xf32>
    %cst_121 = arith.constant dense<0.000000e+00> : vector<4x1024xf32>
    %122 = tpu.matmul %121, %119, %cst_121 {dimension_numbers = #tpu.dot_dimension_numbers<[1], [0], [0], [1], [0, 0, 1, 1], [], []>} : vector<4x4xf32>, vector<4x1024xf32>, vector<4x1024xf32> -> vector<4x1024xf32>
    %123 = arith.addf %116, %122 : vector<4x1024xf32>
    %c0_122 = arith.constant 0 : index
    %c63 = arith.constant 63 : index
    %124 = vector.load %arg6[%c0_122, %c63] : memref<4x1152xf32, #tpu.memory_space<vmem>>, vector<4x1024xf32>
    %cst_123 = arith.constant 0.000000e+00 : f32
    %125 = vector.broadcast %cst_123 : f32 to vector<4x1024xf32>
    %126 = arith.select %101, %124, %125 : vector<4x1024xi1>, vector<4x1024xf32>
    %c3_124 = arith.constant 3 : index
    %c0_125 = arith.constant 0 : index
    %c0_126 = arith.constant 0 : index
    %127 = vector.load %arg2[%c3_124, %c0_125, %c0_126] : memref<9x4x4xf32, #tpu.memory_space<vmem>>, vector<1x4x4xf32>
    %128 = vector.shape_cast %127 : vector<1x4x4xf32> to vector<4x4xf32>
    %cst_127 = arith.constant dense<0.000000e+00> : vector<4x1024xf32>
    %129 = tpu.matmul %128, %126, %cst_127 {dimension_numbers = #tpu.dot_dimension_numbers<[1], [0], [0], [1], [0, 0, 1, 1], [], []>} : vector<4x4xf32>, vector<4x1024xf32>, vector<4x1024xf32> -> vector<4x1024xf32>
    %130 = arith.addf %123, %129 : vector<4x1024xf32>
    %c0_128 = arith.constant 0 : index
    %c64_129 = arith.constant 64 : index
    %131 = vector.load %arg6[%c0_128, %c64_129] : memref<4x1152xf32, #tpu.memory_space<vmem>>, vector<4x1024xf32>
    %c4_130 = arith.constant 4 : index
    %c0_131 = arith.constant 0 : index
    %c0_132 = arith.constant 0 : index
    %132 = vector.load %arg2[%c4_130, %c0_131, %c0_132] : memref<9x4x4xf32, #tpu.memory_space<vmem>>, vector<1x4x4xf32>
    %133 = vector.shape_cast %132 : vector<1x4x4xf32> to vector<4x4xf32>
    %cst_133 = arith.constant dense<0.000000e+00> : vector<4x1024xf32>
    %134 = tpu.matmul %133, %131, %cst_133 {dimension_numbers = #tpu.dot_dimension_numbers<[1], [0], [0], [1], [0, 0, 1, 1], [], []>} : vector<4x4xf32>, vector<4x1024xf32>, vector<4x1024xf32> -> vector<4x1024xf32>
    %135 = arith.addf %130, %134 : vector<4x1024xf32>
    %c0_134 = arith.constant 0 : index
    %c65 = arith.constant 65 : index
    %136 = vector.load %arg6[%c0_134, %c65] : memref<4x1152xf32, #tpu.memory_space<vmem>>, vector<4x1024xf32>
    %cst_135 = arith.constant 0.000000e+00 : f32
    %137 = vector.broadcast %cst_135 : f32 to vector<4x1024xf32>
    %138 = arith.select %103, %136, %137 : vector<4x1024xi1>, vector<4x1024xf32>
    %c5_136 = arith.constant 5 : index
    %c0_137 = arith.constant 0 : index
    %c0_138 = arith.constant 0 : index
    %139 = vector.load %arg2[%c5_136, %c0_137, %c0_138] : memref<9x4x4xf32, #tpu.memory_space<vmem>>, vector<1x4x4xf32>
    %140 = vector.shape_cast %139 : vector<1x4x4xf32> to vector<4x4xf32>
    %cst_139 = arith.constant dense<0.000000e+00> : vector<4x1024xf32>
    %141 = tpu.matmul %140, %138, %cst_139 {dimension_numbers = #tpu.dot_dimension_numbers<[1], [0], [0], [1], [0, 0, 1, 1], [], []>} : vector<4x4xf32>, vector<4x1024xf32>, vector<4x1024xf32> -> vector<4x1024xf32>
    %142 = arith.addf %135, %141 : vector<4x1024xf32>
    %c0_140 = arith.constant 0 : index
    %c95 = arith.constant 95 : index
    %143 = vector.load %arg6[%c0_140, %c95] : memref<4x1152xf32, #tpu.memory_space<vmem>>, vector<4x1024xf32>
    %cst_141 = arith.constant 0.000000e+00 : f32
    %144 = vector.broadcast %cst_141 : f32 to vector<4x1024xf32>
    %145 = arith.select %101, %143, %144 : vector<4x1024xi1>, vector<4x1024xf32>
    %c6_142 = arith.constant 6 : index
    %c0_143 = arith.constant 0 : index
    %c0_144 = arith.constant 0 : index
    %146 = vector.load %arg2[%c6_142, %c0_143, %c0_144] : memref<9x4x4xf32, #tpu.memory_space<vmem>>, vector<1x4x4xf32>
    %147 = vector.shape_cast %146 : vector<1x4x4xf32> to vector<4x4xf32>
    %cst_145 = arith.constant dense<0.000000e+00> : vector<4x1024xf32>
    %148 = tpu.matmul %147, %145, %cst_145 {dimension_numbers = #tpu.dot_dimension_numbers<[1], [0], [0], [1], [0, 0, 1, 1], [], []>} : vector<4x4xf32>, vector<4x1024xf32>, vector<4x1024xf32> -> vector<4x1024xf32>
    %149 = arith.addf %142, %148 : vector<4x1024xf32>
    %c0_146 = arith.constant 0 : index
    %c96_147 = arith.constant 96 : index
    %150 = vector.load %arg6[%c0_146, %c96_147] : memref<4x1152xf32, #tpu.memory_space<vmem>>, vector<4x1024xf32>
    %c7_148 = arith.constant 7 : index
    %c0_149 = arith.constant 0 : index
    %c0_150 = arith.constant 0 : index
    %151 = vector.load %arg2[%c7_148, %c0_149, %c0_150] : memref<9x4x4xf32, #tpu.memory_space<vmem>>, vector<1x4x4xf32>
    %152 = vector.shape_cast %151 : vector<1x4x4xf32> to vector<4x4xf32>
    %cst_151 = arith.constant dense<0.000000e+00> : vector<4x1024xf32>
    %153 = tpu.matmul %152, %150, %cst_151 {dimension_numbers = #tpu.dot_dimension_numbers<[1], [0], [0], [1], [0, 0, 1, 1], [], []>} : vector<4x4xf32>, vector<4x1024xf32>, vector<4x1024xf32> -> vector<4x1024xf32>
    %154 = arith.addf %149, %153 : vector<4x1024xf32>
    %c0_152 = arith.constant 0 : index
    %c97 = arith.constant 97 : index
    %155 = vector.load %arg6[%c0_152, %c97] : memref<4x1152xf32, #tpu.memory_space<vmem>>, vector<4x1024xf32>
    %cst_153 = arith.constant 0.000000e+00 : f32
    %156 = vector.broadcast %cst_153 : f32 to vector<4x1024xf32>
    %157 = arith.select %103, %155, %156 : vector<4x1024xi1>, vector<4x1024xf32>
    %c8_154 = arith.constant 8 : index
    %c0_155 = arith.constant 0 : index
    %c0_156 = arith.constant 0 : index
    %158 = vector.load %arg2[%c8_154, %c0_155, %c0_156] : memref<9x4x4xf32, #tpu.memory_space<vmem>>, vector<1x4x4xf32>
    %159 = vector.shape_cast %158 : vector<1x4x4xf32> to vector<4x4xf32>
    %cst_157 = arith.constant dense<0.000000e+00> : vector<4x1024xf32>
    %160 = tpu.matmul %159, %157, %cst_157 {dimension_numbers = #tpu.dot_dimension_numbers<[1], [0], [0], [1], [0, 0, 1, 1], [], []>} : vector<4x4xf32>, vector<4x1024xf32>, vector<4x1024xf32> -> vector<4x1024xf32>
    %161 = arith.addf %154, %160 : vector<4x1024xf32>
    %c0_158 = arith.constant 0 : index
    %c0_159 = arith.constant 0 : index
    %162 = vector.load %arg4[%c0_158, %c0_159] : memref<4x1xf32, #tpu.memory_space<vmem>>, vector<4x1xf32>
    %163 = vector.broadcast %162 : vector<4x1xf32> to vector<4x1024xf32>
    %164 = arith.addf %161, %163 : vector<4x1024xf32>
    %c0_160 = arith.constant 0 : index
    %c0_161 = arith.constant 0 : index
    %c0_162 = arith.constant 0 : index
    %165 = vector.load %arg5[%c0_160, %c0_161, %c0_162] : memref<1x4x1024xf32, #tpu.memory_space<vmem>>, vector<1x4x1024xf32>
    %166 = vector.shape_cast %165 : vector<1x4x1024xf32> to vector<4x1024xf32>
    %167 = vector.shape_cast %164 : vector<4x1024xf32> to vector<1x4x1024xf32>
    tpu.vector_store %arg5[%c0_160, %c0_161, %c0_162], %167 {strides = array<i32>} : memref<1x4x1024xf32, #tpu.memory_space<vmem>>, vector<1x4x1024xf32>,
    return
  }
  func.func @transform_0(%arg0: i32) -> (i32, i32, i32, i32) {
    %c0_i32 = arith.constant 0 : i32
    %c0_i32_0 = arith.constant 0 : i32
    %c0_i32_1 = arith.constant 0 : i32
    %c0_i32_2 = arith.constant 0 : i32
    return %arg0, %c0_i32, %c0_i32_0, %c0_i32_1 : i32, i32, i32, i32
  }
  func.func @transform_1(%arg0: i32) -> (i32, i32, i32) {
    %c0_i32 = arith.constant 0 : i32
    %c0_i32_0 = arith.constant 0 : i32
    %c0_i32_1 = arith.constant 0 : i32
    %c0_i32_2 = arith.constant 0 : i32
    return %c0_i32, %c0_i32_0, %c0_i32_1 : i32, i32, i32
  }
  func.func @transform_2(%arg0: i32) -> (i32, i32) {
    %c0_i32 = arith.constant 0 : i32
    %c0_i32_0 = arith.constant 0 : i32
    %c0_i32_1 = arith.constant 0 : i32
    return %c0_i32, %c0_i32_0 : i32, i32
  }
  func.func @transform_3(%arg0: i32) -> (i32, i32) {
    %c0_i32 = arith.constant 0 : i32
    %c0_i32_0 = arith.constant 0 : i32
    %c0_i32_1 = arith.constant 0 : i32
    return %c0_i32, %c0_i32_0 : i32, i32
  }
  func.func @transform_4(%arg0: i32) -> (i32, i32, i32) {
    %c0_i32 = arith.constant 0 : i32
    %c0_i32_0 = arith.constant 0 : i32
    %c0_i32_1 = arith.constant 0 : i32
    return %arg0, %c0_i32, %c0_i32_0 : i32, i32, i32
  }
}

</mosaic_0001>

<bundles_post_ra>
// kernel: upsample_forward.1
= control target key start
LH: loop header
LB: loop body
LE: loop exit
PB: predicated region body
PF: predicated region fallthrough
CT: control target
= control target key end

     0   :  { %9 = vsyncpa [#allocation4], 0  ;;  %s5139_s0 = inlined_call_operand.hbm [shape: f32[2,4,16,16], index: 0, kind: input, shape index: {}]   ;;  %s5140_s1 = inlined_call_operand.hbm [shape: f32[9,4,4], index: 1, kind: input, shape index: {}]   ;;  %s5141_s2 = inlined_call_operand.vmem [shape: f32[16,32], index: 2, kind: input, shape index: {}]   ;;  %s5142_s3 = inlined_call_operand.vmem [shape: f32[4,1], index: 3, kind: input, shape index: {}]   ;;  %s5143_s4 = inlined_call_operand.vmem [shape: f32[2,4,1024], index: 4, kind: output, shape index: {}]  }
   0x1   :  { %11 = vsyncpa [#allocation4 + $0x1], 0 }
   0x2   :  { %12 = vsyncpa [#allocation6], 0  ;;  %s3883_s15 = smov 0   ;;  %s3885_s16 = smov 0  }
   0x3   :  { %s3887_s17 = smov 0   ;;  %s3889_s18 = smov 0  }
   0x4 LB: > { %s3902_s19 = sadd.s32 4294967295, %s3840_s18   ;;  %p38_p0 = scmp.ne.s32.totalorder %s3832_s16, %s3828_s15  ;;  %s3840_s18 = sphi %s3889_s18, %s5338_s18   ;;  %s3836_s17 = sphi %s3887_s17, %s5337_s17   ;;  %s3832_s16 = sphi %s3885_s16, %s5336_s16   ;;  %s3828_s15 = sphi %s3883_s15, %s5335_s15  }
   0x5   : > { %p39_p1 = scmp.eq.s32.totalorder %s3902_s19, 0  ;;  %p3501_p2 = scmp.ge.s32.totalorder %s3840_s18, 1 }
   0x6   : > { %p138_p3 = scmp.lt.s32.totalorder %s3840_s18, 3  ;;  %s149_s23 = sshll.u32 %s5140_s1, 4  ;;  %s150_s23 = int_to_ptr.hbm [resolvable:$true] %s149_s23 }
   0x7   : > { %p3910_p4 = por %p39_p1, %p38_p0  ;;  %s3842_s25 = smov [#allocation5]  }
   0x8   : > { %p3917_p5 = pnand %p3501_p2, %p138_p3  ;;  %s151_s26 = sshll.u32 %s3842_s25, 4  ;;  %s152_s26 = int_to_ptr.vmem [resolvable:$true] %s151_s26 }
   0x9   : > { %s3926_s27 = sadd.s32 1, %s3840_s18   ;;  %s3843_s28 = smov 64  }
   0xa   : > { %p3682_p6 = pneg %p3917_p5  ;;  %s3844_s29 = smov 4  }
   0xb   : > { %s22_s30 = ssub.s32 %s3840_s18, %s3926_s27  ;;  %s25_s5 = sadd.s32 1, %s3836_s17 }
   0xc   : > { %p3683_p7 = pnand %p3682_p6, %p39_p1  ;;  %p23_p8 = scmp.eq.s32.totalorder %s22_s30, 0 }
   0xd   : > { %p32_p9 = scmp.ne.s32.totalorder %s3836_s17, %s3832_s16  ;;  %p33_p10 = scmp.eq.s32.totalorder %s3840_s18, 0 }
   0xe   : > { %3685 = dma.hbm_to_vmem [thread:$0]  (!%p3683_p7), %s150_s23, 576, %s152_s26, [#allocation6], %s3843_s28, %s3843_s28, %s3844_s29  }
   0xf   : > { %p3691_p11 = scmp.lt.s32.totalorder %s3840_s18, 2  ;;  %p34_p12 = por %p33_p10, %p32_p9 }
  0x10   : > { %s3936_s6 = scalar_select %p23_p8, %s3836_s17, %s25_s5  }
  0x11   : > { %s171_s7 = sand.u32 1, %s3836_s17   ;;  %s3674_s9 = sshll.u32 %s3840_s18, 6 }
  0x12   : > { %s3504_s8 = sshll.u32 %s171_s7, 6  ;;  %s180_s12 = scalar_lea.hbm %s5139_s0, %s3674_s9 }
  0x13   : > { %s175_s13 = scalar_lea.vmem [#allocation3], %s3504_s8  ;;  %s181_s15 = sshll.u32 %s180_s12, 4  ;;  %s182_s15 = int_to_ptr.hbm [resolvable:$true] %s181_s15 }
  0x14   : > { %s183_s14 = sshll.u32 %s175_s13, 4  ;;  %p3943_p13 = pnand %p3691_p11, %p34_p12  ;;  %s184_s14 = int_to_ptr.vmem [resolvable:$true] %s183_s14 }
  0x15   : > { %s172_s22 = scalar_lea.sflag [#allocation4], %s171_s7  ;;  %s3772_s23 = sshra.s32 %s182_s15, 4  ;;  %s3773_s23 = int_to_ptr.hbm [resolvable:$true] %s3772_s23 }
  0x16   : > { %s3774_s25 = scalar_lea.hbm %s3773_s23, 64  ;;  %p3776_p2 = pneg %p3943_p13 }
  0x17   : > { %p3775_p0 = scmp.ne.s32.totalorder %s3773_s23, %s3774_s25  ;;  %s3779_s28 = scalar_lea.hbm %s5139_s0, 128 }
  0x18   : > { %p3780_p7 = scmp.lt.s32.totalorder %s3773_s23, %s5139_s0  ;;  %p3781_p8 = scmp.lt.s32.totalorder %s3779_s28, %s3774_s25 }
  0x19   : > { %p3777_p3 = pnand %p3776_p2, %p3775_p0 }
  0x1a   : > { %p3782_p9 = por %p3781_p8, %p3780_p7 }
  0x1b   : > { %p3778_p6 = pneg %p3777_p3 }
  0x1d   : > { %p3783_p10 = pnand %p3782_p9, %p3778_p6 }
  0x1f   : > { %3786 = shalt.err (!%p3783_p10)
}
  0x20   : > { %s3845_s5 = smov 128   ;;  %s3846_s7 = smov 8  }
  0x21   : > { %3689 = dma.hbm_to_vmem [thread:$0]  (!%p3943_p13), %s182_s15, 1024, %s184_s14, %s172_s22, %s3845_s5, %s3845_s5, %s3846_s7  }
  0x22   : > { %195 = sbr.rel (%p3917_p5) target bundleno = 811 (0x32b), region = 36  ;;  %s197_s8 = sand.u32 (!%p3917_p5), 1, %s3832_s16  }
  0x23   : > { %s3508_s9 = sshll.u32 (!%p3917_p5), %s197_s8, 6  ;;  %s198_s10 = scalar_lea.sflag (!%p3917_p5), [#allocation4], %s197_s8 }
  0x24   : > { %s3960_s11 = scalar_lea.vmem (!%p3917_p5), [#allocation3], %s3508_s9 }
  0x27   : > { %3819 = dma.done.wait (%p3910_p4), %s198_s10, 1024  }
  0x28   : > { %3821 = vsyncadd (%p3910_p4), %s198_s10, 4294966272 }
  0x29   : > { %3823 = dma.done.wait (%p39_p1), [#allocation6], 576  }
  0x2a   : > { %3825 = vsyncadd (%p39_p1), [#allocation6], 4294966720  ;;  %vm253_vm0 = vcmask 1041409   ;;  %v3973_v0 = vld [vmem:[%s5141_s2 + $0x8] sm:$0xff]  ;;  %v3978_v1 = vld [vmem:[%s5141_s2] sm:$0xff]  ;;  %vm256_vm1 = vcmask 1042434  }
  0x2b   : > { %v244_v2 = vld [vmem:[%s3960_s11] sm:$0x1]  ;;  %vm259_vm2 = vcmask 1043459   ;;  %278 = vmatpush.msra.mxu0 %v3973_v0  ;;  %325 = vmatpush.msra.mxu1 %v3973_v0  ;;  %v245_v3 = vld [vmem:[%s3960_s11 + $0x10] sm:$0x1]  ;;  %vm261_vm3 = vcmask 130048  }
  0x2c   : > { %v246_v4 = vld [vmem:[%s3960_s11 + $0x20] sm:$0x1]  ;;  %v247_v5 = vld [vmem:[%s3960_s11 + $0x30] sm:$0x1]  ;;  %369 = vmatpush.msra.mxu2 %v3973_v0  ;;  %v252_v6 = vrot.slane %v245_v3, 7  ;;  %414 = vmatpush.msra.mxu3 %v3973_v0  ;;  %vm331_vm4 = vcmask 257024  }
  0x2d   : > { %v255_v7 = vrot.slane %v246_v4, 6  ;;  %v258_v8 = vrot.slane %v247_v5, 5  ;;  %v295_v9 = vld [vmem:[%s3960_s11 + $0x1] sm:$0x1]  ;;  %279 = vmatpush.msra.mxu0 %v3978_v1  ;;  %326 = vmatpush.msra.mxu1 %v3978_v1  ;;  %v296_v10 = vld [vmem:[%s3960_s11 + $0x11] sm:$0x1] }
  0x2e   : > { %v297_v11 = vld [vmem:[%s3960_s11 + $0x21] sm:$0x1]  ;;  %v298_v12 = vld [vmem:[%s3960_s11 + $0x31] sm:$0x1]  ;;  %370 = vmatpush.msra.mxu2 %v3978_v1  ;;  %v254_v13 = vsel %vm253_vm0, %v252_v6, %v244_v2  ;;  %v303_v14 = vrot.slane %v296_v10, 7  ;;  %415 = vmatpush.msra.mxu3 %v3978_v1  ;;  %s3848_s14 = smov 96  }
  0x2f   : > { %v305_v15 = vrot.slane %v297_v11, 6  ;;  %v307_v16 = vrot.slane %v298_v12, 5  ;;  %v339_v17 = vld [vmem:[%s3960_s11 + $0x2] sm:$0x1]  ;;  %v257_v18 = vsel %vm256_vm1, %v255_v7, %v254_v13  ;;  %v340_v19 = vld [vmem:[%s3960_s11 + $0x12] sm:$0x1]  ;;  %456 = vmatpush.msrb.mxu0 %v3973_v0  ;;  %501 = vmatpush.msrb.mxu1 %v3973_v0 }
  0x30   : > { %v341_v20 = vld [vmem:[%s3960_s11 + $0x22] sm:$0x1]  ;;  %v342_v21 = vld [vmem:[%s3960_s11 + $0x32] sm:$0x1]  ;;  %v260_v22 = vsel %vm259_vm2, %v258_v8, %v257_v18  ;;  %v304_v23 = vsel %vm253_vm0, %v303_v14, %v295_v9  ;;  %v347_v24 = vrot.slane %v340_v19, 7  ;;  %543 = vmatpush.msrb.mxu2 %v3973_v0  ;;  %588 = vmatpush.msrb.mxu3 %v3973_v0  ;;  %s3849_s15 = smov 32  }
  0x31   : > { %v349_v25 = vrot.slane %v341_v20, 6  ;;  %v384_v26 = vld [vmem:[%s3960_s11 + $0x3] sm:$0x1]  ;;  %v385_v27 = vld [vmem:[%s3960_s11 + $0x13] sm:$0x1]  ;;  %3512 = vmatmul.msk.f32.vlgmr.msra.gmra.mxu0 %vm261_vm3, %v260_v22  ;;  %v306_v28 = vsel %vm256_vm1, %v305_v15, %v304_v23  ;;  %v351_v29 = vrot.slane %v342_v21, 5  ;;  %502 = vmatpush.msrb.mxu1 %v3978_v1 }
  0x32   : > { %v386_v30 = vld [vmem:[%s3960_s11 + $0x23] sm:$0x1]  ;;  %v387_v31 = vld [vmem:[%s3960_s11 + $0x33] sm:$0x1]  ;;  %v392_v32 = vrot.slane %v385_v27, 7  ;;  %v308_v33 = vsel %vm259_vm2, %v307_v16, %v306_v28  ;;  %v348_v34 = vsel %vm253_vm0, %v347_v24, %v339_v17  ;;  %457 = vmatpush.msrb.mxu0 %v3978_v1  ;;  %544 = vmatpush.msrb.mxu2 %v3978_v1  ;;  %s3850_s21 = smov 64  }
  0x33   : > { %v394_v35 = vrot.slane %v386_v30, 6  ;;  %v396_v36 = vrot.slane %v387_v31, 5  ;;  %v426_v37 = vld [vmem:[%s3960_s11 + $0x4] sm:$0x1]  ;;  %v427_v38 = vld [vmem:[%s3960_s11 + $0x14] sm:$0x1]  ;;  %3513 = vmatmul.msk.f32.vlgmr.msra.gmra.mxu1 %vm261_vm3, %v308_v33  ;;  %v350_v39 = vsel %vm256_vm1, %v349_v25, %v348_v34  ;;  %589 = vmatpush.msrb.mxu3 %v3978_v1 }
  0x34   : > { %v393_v40 = vsel %vm253_vm0, %v392_v32, %v384_v26  ;;  %v428_v41 = vld [vmem:[%s3960_s11 + $0x24] sm:$0x1]  ;;  %v429_v42 = vld [vmem:[%s3960_s11 + $0x34] sm:$0x1]  ;;  %v434_v43 = vrot.slane %v427_v38, 7  ;;  %v352_v44 = vsel %vm259_vm2, %v351_v29, %v350_v39  ;;  %675 = vmatpush.msra.mxu1 %v3973_v0  ;;  %630 = vmatpush.msra.mxu0 %v3973_v0  ;;  %vm337_vm5 = vcmask 519424  }
  0x35   : > { %v395_v45 = vsel %vm256_vm1, %v394_v35, %v393_v40  ;;  %v436_v46 = vrot.slane %v428_v41, 6  ;;  %v438_v47 = vrot.slane %v429_v42, 5  ;;  %v471_v48 = vld [vmem:[%s3960_s11 + $0x5] sm:$0x1]  ;;  %v472_v49 = vld [vmem:[%s3960_s11 + $0x15] sm:$0x1]  ;;  %3514 = vmatmul.msk.f32.vlgmr.msra.gmra.mxu2 %vm261_vm3, %v352_v44 }
  0x36   : > { %v397_v50 = vsel %vm259_vm2, %v396_v36, %v395_v45  ;;  %v435_v51 = vsel %vm253_vm0, %v434_v43, %v426_v37  ;;  %v473_v52 = vld [vmem:[%s3960_s11 + $0x25] sm:$0x1]  ;;  %v474_v53 = vld [vmem:[%s3960_s11 + $0x35] sm:$0x1]  ;;  %v479_v54 = vrot.slane %v472_v49, 7  ;;  %676 = vmatpush.msra.mxu1 %v3978_v1  ;;  %631 = vmatpush.msra.mxu0 %v3978_v1  ;;  %vm288_vm6 = vcmask 781824  }
  0x37   : > { %3515 = vmatmul.msk.f32.vlgmr.msra.gmra.mxu3 %vm261_vm3, %v397_v50  ;;  %v437_v55 = vsel %vm256_vm1, %v436_v46, %v435_v51  ;;  %v481_v56 = vrot.slane %v473_v52, 6  ;;  %v483_v57 = vrot.slane %v474_v53, 5  ;;  %v513_v58 = vld [vmem:[%s3960_s11 + $0x6] sm:$0x1]  ;;  %v514_v59 = vld [vmem:[%s3960_s11 + $0x16] sm:$0x1]  ;;  %717 = vmatpush.msra.mxu2 %v3973_v0 }
  0x38   : > { %v439_v60 = vsel %vm259_vm2, %v438_v47, %v437_v55  ;;  %v480_v61 = vsel %vm253_vm0, %v479_v54, %v471_v48  ;;  %v515_v62 = vld [vmem:[%s3960_s11 + $0x26] sm:$0x1]  ;;  %v516_v63 = vld [vmem:[%s3960_s11 + $0x36] sm:$0x1]  ;;  %v521_v2 = vrot.slane %v514_v59, 7  ;;  %762 = vmatpush.msra.mxu3 %v3973_v0  ;;  %vm293_vm7 = vcmask 1044224  }
  0x39   : > { %v482_v3 = vsel %vm256_vm1, %v481_v56, %v480_v61  ;;  %v523_v4 = vrot.slane %v515_v62, 6  ;;  %v525_v5 = vrot.slane %v516_v63, 5  ;;  %v558_v6 = vld [vmem:[%s3960_s11 + $0x7] sm:$0x1]  ;;  %v559_v7 = vld [vmem:[%s3960_s11 + $0x17] sm:$0x1]  ;;  %3516 = vmatmul.msk.f32.vlgmr.msrb.gmra.mxu0 %vm261_vm3, %v439_v60  ;;  %718 = vmatpush.msra.mxu2 %v3978_v1 }
  0x3a   : > { %v484_v8 = vsel %vm259_vm2, %v483_v57, %v482_v3  ;;  %v522_v9 = vsel %vm253_vm0, %v521_v2, %v513_v58  ;;  %v560_v10 = vld [vmem:[%s3960_s11 + $0x27] sm:$0x1]  ;;  %v561_v11 = vld [vmem:[%s3960_s11 + $0x37] sm:$0x1]  ;;  %v566_v12 = vrot.slane %v559_v7, 7  ;;  %763 = vmatpush.msra.mxu3 %v3978_v1  ;;  %804 = vmatpush.msrb.mxu0 %v3973_v0  ;;  %s3851_s22 = smov 97  }
  0x3b   : > { %v524_v13 = vsel %vm256_vm1, %v523_v4, %v522_v9  ;;  %v568_v14 = vrot.slane %v560_v10, 6  ;;  %v570_v15 = vrot.slane %v561_v11, 5  ;;  %v645_v16 = vld [vmem:[%s3960_s11 + $0x9] sm:$0x1]  ;;  %v646_v17 = vld [vmem:[%s3960_s11 + $0x19] sm:$0x1]  ;;  %3517 = vmatmul.msk.f32.vlgmr.msrb.gmra.mxu1 %vm261_vm3, %v484_v8 }
  0x3c   : > { %v526_v18 = vsel %vm259_vm2, %v525_v5, %v524_v13  ;;  %v567_v19 = vsel %vm253_vm0, %v566_v12, %v558_v6  ;;  %v647_v20 = vld [vmem:[%s3960_s11 + $0x29] sm:$0x1]  ;;  %v648_v21 = vld [vmem:[%s3960_s11 + $0x39] sm:$0x1]  ;;  %v653_v22 = vrot.slane %v646_v17, 7  ;;  %805 = vmatpush.msrb.mxu0 %v3978_v1  ;;  %849 = vmatpush.msrb.mxu1 %v3973_v0  ;;  %s3852_s23 = smov 95  }
  0x3d   : > { %v569_v23 = vsel %vm256_vm1, %v568_v14, %v567_v19  ;;  %v655_v24 = vrot.slane %v647_v20, 6  ;;  %v657_v25 = vrot.slane %v648_v21, 5  ;;  %v600_v26 = vld [vmem:[%s3960_s11 + $0x8] sm:$0x1]  ;;  %v601_v27 = vld [vmem:[%s3960_s11 + $0x18] sm:$0x1]  ;;  %3518 = vmatmul.msk.f32.vlgmr.msrb.gmra.mxu2 %vm261_vm3, %v526_v18 }
  0x3e   : > { %v571_v28 = vsel %vm259_vm2, %v570_v15, %v569_v23  ;;  %v654_v29 = vsel %vm253_vm0, %v653_v22, %v645_v16  ;;  %v602_v30 = vld [vmem:[%s3960_s11 + $0x28] sm:$0x1]  ;;  %v603_v31 = vld [vmem:[%s3960_s11 + $0x38] sm:$0x1]  ;;  %v608_v32 = vrot.slane %v601_v27, 7  ;;  %891 = vmatpush.msrb.mxu2 %v3973_v0  ;;  %850 = vmatpush.msrb.mxu1 %v3978_v1  ;;  %s3853_s25 = smov 65  }
  0x3f   : > { %3519 = vmatmul.msk.f32.vlgmr.msrb.gmra.mxu3 %vm261_vm3, %v571_v28  ;;  %v656_v33 = vsel %vm256_vm1, %v655_v24, %v654_v29  ;;  %v610_v34 = vrot.slane %v602_v30, 6  ;;  %v612_v35 = vrot.slane %v603_v31, 5  ;;  %v687_v36 = vld [vmem:[%s3960_s11 + $0xa] sm:$0x1]  ;;  %v688_v37 = vld [vmem:[%s3960_s11 + $0x1a] sm:$0x1] }
  0x40   : > { %v609_v38 = vsel %vm253_vm0, %v608_v32, %v600_v26  ;;  %v689_v39 = vld [vmem:[%s3960_s11 + $0x2a] sm:$0x1]  ;;  %v690_v40 = vld [vmem:[%s3960_s11 + $0x3a] sm:$0x1]  ;;  %v695_v41 = vrot.slane %v688_v37, 7  ;;  %936 = vmatpush.msrb.mxu3 %v3973_v0  ;;  %v658_v42 = vsel %vm259_vm2, %v657_v25, %v656_v33  ;;  %892 = vmatpush.msrb.mxu2 %v3978_v1  ;;  %s3854_s18 = smov 63  }
  0x41   : > { %v611_v43 = vsel %vm256_vm1, %v610_v34, %v609_v38  ;;  %v697_v44 = vrot.slane %v689_v39, 6  ;;  %v699_v45 = vrot.slane %v690_v40, 5  ;;  %v732_v46 = vld [vmem:[%s3960_s11 + $0xb] sm:$0x1]  ;;  %v733_v47 = vld [vmem:[%s3960_s11 + $0x1b] sm:$0x1] }
  0x42   : > { %v613_v48 = vsel %vm259_vm2, %v612_v35, %v611_v43  ;;  %v696_v0 = vsel %vm253_vm0, %v695_v41, %v687_v36  ;;  %v734_v49 = vld [vmem:[%s3960_s11 + $0x2b] sm:$0x1]  ;;  %v735_v50 = vld [vmem:[%s3960_s11 + $0x3b] sm:$0x1]  ;;  %v740_v51 = vrot.slane %v733_v47, 7  ;;  %937 = vmatpush.msrb.mxu3 %v3978_v1  ;;  %v3847_v36 = vmov 0.0  }
  0x43   : > { %3520 = vmatmul.msk.f32.vlgmr.msra.gmra.mxu0 %vm261_vm3, %v613_v48  ;;  %v698_v52 = vsel %vm256_vm1, %v697_v44, %v696_v0  ;;  %v742_v53 = vrot.slane %v734_v49, 6  ;;  %v744_v54 = vrot.slane %v735_v50, 5  ;;  %v774_v55 = vld [vmem:[%s3960_s11 + $0xc] sm:$0x1]  ;;  %v775_v56 = vld [vmem:[%s3960_s11 + $0x1c] sm:$0x1]  ;;  %3521 = vmatmul.msk.f32.vlgmr.msra.gmra.mxu1 %vm261_vm3, %v658_v42 }
  0x44   : > { %v700_v57 = vsel %vm259_vm2, %v699_v45, %v698_v52  ;;  %v741_v58 = vsel %vm253_vm0, %v740_v51, %v732_v46  ;;  %v776_v59 = vld [vmem:[%s3960_s11 + $0x2c] sm:$0x1]  ;;  %v777_v1 = vld [vmem:[%s3960_s11 + $0x3c] sm:$0x1]  ;;  %v782_v60 = vrot.slane %v775_v56, 7  ;;  %237 = vst [vmem:[#allocation2] sm:$0xff] %v3847_v36 }
  0x45   : > { %v743_v61 = vsel %vm256_vm1, %v742_v53, %v741_v58  ;;  %v784_v62 = vrot.slane %v776_v59, 6  ;;  %v786_v63 = vrot.slane %v777_v1, 5  ;;  %v906_v2 = vld [vmem:[%s3960_s11 + $0xf] sm:$0x1]  ;;  %v907_v3 = vld [vmem:[%s3960_s11 + $0x1f] sm:$0x1]  ;;  %3522 = vmatmul.msk.f32.vlgmr.msra.gmra.mxu2 %vm261_vm3, %v700_v57 }
  0x46   : > { %v745_v4 = vsel %vm259_vm2, %v744_v54, %v743_v61  ;;  %v783_v5 = vsel %vm253_vm0, %v782_v60, %v774_v55  ;;  %v908_v6 = vld [vmem:[%s3960_s11 + $0x2f] sm:$0x1]  ;;  %v909_v7 = vld [vmem:[%s3960_s11 + $0x3f] sm:$0x1]  ;;  %v914_v8 = vrot.slane %v907_v3, 7  ;;  %238 = vst [vmem:[#allocation2 + $0x8] sm:$0xff] %v3847_v36 }
  0x47   : > { %3523 = vmatmul.msk.f32.vlgmr.msra.gmra.mxu3 %vm261_vm3, %v745_v4  ;;  %v785_v9 = vsel %vm256_vm1, %v784_v62, %v783_v5  ;;  %v916_v10 = vrot.slane %v908_v6, 6  ;;  %v819_v11 = vld [vmem:[%s3960_s11 + $0xd] sm:$0x1]  ;;  %v820_v12 = vld [vmem:[%s3960_s11 + $0x1d] sm:$0x1]  ;;  %v918_v15 = vrot.slane %v909_v7, 5 }
  0x48   : > { %v787_v13 = vsel %vm259_vm2, %v786_v63, %v785_v9  ;;  %v915_v14 = vsel %vm253_vm0, %v914_v8, %v906_v2  ;;  %v821_v16 = vld [vmem:[%s3960_s11 + $0x2d] sm:$0x1]  ;;  %v822_v17 = vld [vmem:[%s3960_s11 + $0x3d] sm:$0x1]  ;;  %v827_v18 = vrot.slane %v820_v12, 7  ;;  %239 = vst [vmem:[#allocation2 + $0x10] sm:$0xff] %v3847_v36 }
  0x49   : > { %v917_v19 = vsel %vm256_vm1, %v916_v10, %v915_v14  ;;  %v829_v20 = vrot.slane %v821_v16, 6  ;;  %v831_v21 = vrot.slane %v822_v17, 5  ;;  %v861_v22 = vld [vmem:[%s3960_s11 + $0xe] sm:$0x1]  ;;  %v862_v23 = vld [vmem:[%s3960_s11 + $0x1e] sm:$0x1] }
  0x4a   : > { %v828_v24 = vsel %vm253_vm0, %v827_v18, %v819_v11  ;;  %v863_v25 = vld [vmem:[%s3960_s11 + $0x2e] sm:$0x1]  ;;  %v864_v26 = vld [vmem:[%s3960_s11 + $0x3e] sm:$0x1]  ;;  %v869_v27 = vrot.slane %v862_v23, 7  ;;  %v919_v31 = vsel %vm259_vm2, %v918_v15, %v917_v19  ;;  %240 = vst [vmem:[#allocation2 + $0x18] sm:$0xff] %v3847_v36 }
  0x4b   : > { %3524 = vmatmul.msk.f32.vlgmr.msrb.gmra.mxu0 %vm261_vm3, %v787_v13  ;;  %v830_v28 = vsel %vm256_vm1, %v829_v20, %v828_v24  ;;  %v871_v29 = vrot.slane %v863_v25, 6  ;;  %v873_v30 = vrot.slane %v864_v26, 5  ;;  %241 = vst [vmem:[#allocation2 + $0x20] sm:$0xf] %v3847_v36  ;;  %s3855_s26 = smov 33   ;;  %vm1187_vm8 = vcmask 785408  }
  0x4c   : > { %v832_v32 = vsel %vm259_vm2, %v831_v21, %v830_v28  ;;  %v870_v33 = vsel %vm253_vm0, %v869_v27, %v861_v22  ;;  %vm5148_vm9 = vcmask 1043456   ;;  %vm5149_vm10 = vcmask 31744   ;;  %s3856_s28 = smov 31   ;;  %p232_p1 = scmp.lt.s32.totalorder %s3902_s19, 1 }
  0x4d   : > { %3525 = vmatmul.msk.f32.vlgmr.msrb.gmra.mxu1 %vm261_vm3, %v832_v32  ;;  %v872_v34 = vsel %vm256_vm1, %v871_v29, %v870_v33  ;;  %vm1114_vm11 = vcmask 793600  }
  0x4e   : > { %v874_v35 = vsel %vm259_vm2, %v873_v30, %v872_v34  ;;  %vm5144_vm2 = vcmask 777216   ;;  %s5340_s19 = smov (!%p232_p1, %s3902_s19), 1 }
  0x4f   : > { %3527 = vmatmul.msk.f32.vlgmr.msrb.gmra.mxu3 %vm261_vm3, %v919_v31  ;;  %3526 = vmatmul.msk.f32.vlgmr.msrb.gmra.mxu2 %vm261_vm3, %v874_v35  ;;  %s3675_s5 = sshll.u32 %s5340_s19, 5 }
  0x50   : > { %s5111_s9 = scalar_lea.vmem %s5143_s4, %s3675_s5 }
  0xae   : > { %v281_v37 = vpop.f32.mrf.mxu0 }
  0xaf   : > { %290 = vrot.lane.b32.xlu1 %v281_v37, %s3848_s14 }
  0xb0   : > { %v328_v38 = vpop.f32.mrf.mxu1 }
  0xb1   : > { %332 = vst.msk [vmem:[#allocation2 + $0x4] sm:$0xf] %vm331_vm4, %v328_v38  ;;  %334 = vrot.lane.b32.xlu0 %v328_v38, %s3849_s15 }
  0xb6   : > { %v459_v42 = vpop.f32.mrf.mxu0 }
  0xb8   : > { %v372_v39 = vpop.f32.mrf.mxu2  ;;  %v504_v40 = vpop.f32.mrf.mxu1 }
  0xb9   : > { %380 = vrot.lane.b32.xlu2 %v372_v39, %s3848_s14  ;;  %376 = vrot.lane.b32.xlu1 %v372_v39, %s3850_s21  ;;  %507 = vst.msk [vmem:[#allocation2 + $0xc] sm:$0xf] %vm331_vm4, %v504_v40 }
  0xba   : > { %v417_v41 = vpop.f32.mrf.mxu3  ;;  %285 = vrot.lane.b32.xlu0 %v281_v37, %s3850_s21 }
  0xbb   : > { %420 = vst.msk [vmem:[#allocation2 + $0x8] sm:$0xf] %vm331_vm4, %v417_v41 }
  0xc0   : > { %v678_v43 = vpop.f32.mrf.mxu1  ;;  %v546_v45 = vpop.f32.mrf.mxu2 }
  0xc1   : > { %422 = vrot.lane.b32.xlu2 %v417_v41, %s3849_s15  ;;  %467 = vrot.lane.b32.xlu1 %v459_v42, %s3848_s14  ;;  %681 = vst.msk [vmem:[#allocation2 + $0x14] sm:$0xf] %vm331_vm4, %v678_v43  ;;  %v633_v48 = vpop.f32.mrf.mxu0 }
  0xc2   : > { %v591_v44 = vpop.f32.mrf.mxu3  ;;  %509 = vrot.lane.b32.xlu0 %v504_v40, %s3849_s15 }
  0xc3   : > { %594 = vst.msk [vmem:[#allocation2 + $0x10] sm:$0xf] %vm331_vm4, %v591_v44 }
  0xc8   : > { %v720_v49 = vpop.f32.mrf.mxu2 }
  0xc9   : > { %554 = vrot.lane.b32.xlu2 %v546_v45, %s3848_s14  ;;  %596 = vrot.lane.b32.xlu1 %v591_v44, %s3849_s15  ;;  %v807_v50 = vpop.f32.mrf.mxu0 }
  0xca   : > { %v765_v46 = vpop.f32.mrf.mxu3  ;;  %v852_v47 = vpop.f32.mrf.mxu1  ;;  %463 = vrot.lane.b32.xlu0 %v459_v42, %s3850_s21 }
  0xcb   : > { %768 = vst.msk [vmem:[#allocation2 + $0x18] sm:$0xf] %vm331_vm4, %v765_v46 }
  0xcc   : > { %855 = vst.msk [vmem:[#allocation2 + $0x1c] sm:$0xf] %vm331_vm4, %v852_v47 }
  0xd1   : > { %683 = vrot.lane.b32.xlu2 %v678_v43, %s3849_s15  ;;  %550 = vrot.lane.b32.xlu1 %v546_v45, %s3850_s21 }
  0xd2   : > { %v939_v0 = vpop.f32.mrf.mxu3  ;;  %641 = vrot.lane.b32.xlu0 %v633_v48, %s3848_s14  ;;  %v894_v51 = vpop.f32.mrf.mxu2 }
  0xd3   : > { %942 = vst.msk [vmem:[#allocation2 + $0x20] sm:$0xf] %vm331_vm4, %v939_v0 }
  0xd9   : > { %637 = vrot.lane.b32.xlu2 %v633_v48, %s3850_s21  ;;  %728 = vrot.lane.b32.xlu1 %v720_v49, %s3848_s14 }
  0xda   : > { %724 = vrot.lane.b32.xlu0 %v720_v49, %s3850_s21 }
  0xe1   : > { %811 = vrot.lane.b32.xlu2 %v807_v50, %s3850_s21  ;;  %857 = vrot.lane.b32.xlu1 %v852_v47, %s3849_s15 }
  0xe2   : > { %770 = vrot.lane.b32.xlu0 %v765_v46, %s3849_s15 }
  0xe9   : > { %944 = vrot.lane.b32.xlu2 %v939_v0, %s3849_s15  ;;  %815 = vrot.lane.b32.xlu1 %v807_v50, %s3848_s14 }
  0xea   : > { %898 = vrot.lane.b32.xlu0 %v894_v51, %s3850_s21 }
  0xf1   : > { %902 = vrot.lane.b32.xlu2 %v894_v51, %s3848_s14 }
 0x113   : > { %v381_v52 = vpop.permute.xlu2 %380 }
 0x11b   : > { %v423_v53 = vpop.permute.xlu2 %422 }
 0x11c   : > { %425 = vst.msk [vmem:[#allocation2 + $0x8] sm:$0xf] %vm337_vm5, %v423_v53 }
 0x121   : > { %v291_v54 = vpop.permute.xlu1 %290 }
 0x123   : > { %v555_v55 = vpop.permute.xlu2 %554  ;;  %v335_v56 = vpop.permute.xlu0 %334 }
 0x124   : > { %338 = vst.msk [vmem:[#allocation2 + $0x4] sm:$0xf] %vm337_vm5, %v335_v56 }
 0x12b   : > { %v684_v57 = vpop.permute.xlu2 %683  ;;  %v377_v58 = vpop.permute.xlu1 %376 }
 0x12c   : > { %686 = vst.msk [vmem:[#allocation2 + $0x14] sm:$0xf] %vm337_vm5, %v684_v57  ;;  %v286_v59 = vpop.permute.xlu0 %285 }
 0x12d   : > { %379 = vst.msk [vmem:[#allocation2 + $0x4] sm:$0xf] %vm288_vm6, %v377_v58 }
 0x12e   : > { %383 = vst.msk [vmem:[#allocation2 + $0x4] sm:$0xf] %vm293_vm7, %v381_v52 }
 0x12f   : > { %289 = vst.msk [vmem:[#allocation2] sm:$0xf] %vm288_vm6, %v286_v59 }
 0x130   : > { %294 = vst.msk [vmem:[#allocation2] sm:$0xf] %vm293_vm7, %v291_v54 }
 0x133   : > { %v638_v1 = vpop.permute.xlu2 %637  ;;  %v468_v60 = vpop.permute.xlu1 %467 }
 0x134   : > { %v510_v61 = vpop.permute.xlu0 %509 }
 0x135   : > { %512 = vst.msk [vmem:[#allocation2 + $0xc] sm:$0xf] %vm337_vm5, %v510_v61 }
 0x137   : > { %v4180_v62 = vld [vmem:[#allocation2] sm:$0xff] }
 0x138   : > { %1079 = vst [vmem:[#allocation1] ss:$2 sm:$0xff] %v4180_v62 }
 0x13b   : > { %v812_v63 = vpop.permute.xlu2 %811  ;;  %v597_v2 = vpop.permute.xlu1 %596 }
 0x13c   : > { %599 = vst.msk [vmem:[#allocation2 + $0x10] sm:$0xf] %vm337_vm5, %v597_v2  ;;  %v464_v3 = vpop.permute.xlu0 %463 }
 0x13d   : > { %640 = vst.msk [vmem:[#allocation2 + $0x10] sm:$0xf] %vm288_vm6, %v638_v1 }
 0x13e   : > { %466 = vst.msk [vmem:[#allocation2 + $0x8] sm:$0xf] %vm288_vm6, %v464_v3 }
 0x13f   : > { %v1086_v4 = vld.sshfl [vmem:[#allocation1] sm:$0xff pattern:$0x75316420]  ;;  %v1087_v5 = vld.sshfl [vmem:[#allocation1 + $0x8] sm:$0xff pattern:$0x75316420] }
 0x140   : > { %470 = vst.msk [vmem:[#allocation2 + $0x8] sm:$0xf] %vm293_vm7, %v468_v60  ;;  %1098 = vrot.lane.b32.xlu0 %v1087_v5, %s3851_s22  ;;  %1096 = vrot.lane.b32.xlu1 %v1086_v4, %s3851_s22 }
 0x143   : > { %v945_v6 = vpop.permute.xlu2 %944  ;;  %v551_v7 = vpop.permute.xlu1 %550 }
 0x144   : > { %947 = vst.msk [vmem:[#allocation2 + $0x20] sm:$0xf] %vm337_vm5, %v945_v6  ;;  %v642_v8 = vpop.permute.xlu0 %641 }
 0x145   : > { %553 = vst.msk [vmem:[#allocation2 + $0xc] sm:$0xf] %vm288_vm6, %v551_v7 }
 0x146   : > { %557 = vst.msk [vmem:[#allocation2 + $0xc] sm:$0xf] %vm293_vm7, %v555_v55 }
 0x147   : > { %644 = vst.msk [vmem:[#allocation2 + $0x10] sm:$0xf] %vm293_vm7, %v642_v8 }
 0x14b   : > { %v1073_v9 = vld [vmem:[#allocation2 + $0x20] sm:$0xf]  ;;  %v729_v10 = vpop.permute.xlu1 %728  ;;  %v903_v24 = vpop.permute.xlu2 %902 }
 0x14c   : > { %1094 = vst [vmem:[#allocation1] ss:$2 sm:$0xff] %v1073_v9  ;;  %v725_v11 = vpop.permute.xlu0 %724  ;;  %v1144_v19 = vld [vmem:[#allocation2 + $0x20] sm:$0xf] }
 0x14d   : > { %v4193_v12 = vld [vmem:[#allocation2 + $0x8] sm:$0xff]  ;;  %727 = vst.msk [vmem:[#allocation2 + $0x14] sm:$0xf] %vm288_vm6, %v725_v11  ;;  %v1568_v36 = vld [vmem:[#allocation2 + $0x20] sm:$0xf] }
 0x14e   : > { %1081 = vst [vmem:[#allocation1 + $0x10] ss:$2 sm:$0xff] %v4193_v12  ;;  %v1835_v54 = vld [vmem:[#allocation2 + $0x20] sm:$0xf] }
 0x14f   : > { %731 = vst.msk [vmem:[#allocation2 + $0x14] sm:$0xf] %vm293_vm7, %v729_v10  ;;  %v2102_v4 = vld [vmem:[#allocation2 + $0x20] sm:$0xf] }
 0x153   : > { %v1095_v13 = vld.sshfl [vmem:[#allocation1] sm:$0xff pattern:$0x75316420]  ;;  %v858_v14 = vpop.permute.xlu1 %857 }
 0x154   : > { %1152 = vst [vmem:[#allocation1] ss:$2 sm:$0xff] %v4180_v62  ;;  %v771_v15 = vpop.permute.xlu0 %770 }
 0x155   : > { %773 = vst.msk [vmem:[#allocation2 + $0x18] sm:$0xf] %vm337_vm5, %v771_v15  ;;  %v1088_v16 = vld.sshfl [vmem:[#allocation1 + $0x10] sm:$0xff pattern:$0x75316420] }
 0x156   : > { %814 = vst.msk [vmem:[#allocation2 + $0x18] sm:$0xf] %vm288_vm6, %v812_v63  ;;  %v4201_v17 = vld [vmem:[#allocation2 + $0x10] sm:$0xff]  ;;  %1100 = vrot.lane.b32.xlu2 %v1088_v16, %s3851_s22 }
 0x157   : > { %860 = vst.msk [vmem:[#allocation2 + $0x1c] sm:$0xf] %vm337_vm5, %v858_v14  ;;  %v1089_v18 = vld.sshfl [vmem:[#allocation1 + $0x18] sm:$0xff pattern:$0x75316420] }
 0x158   : > { %1083 = vst [vmem:[#allocation1 + $0x20] ss:$2 sm:$0xff] %v4201_v17  ;;  %1102 = vrot.lane.b32.xlu0 %v1089_v18, %s3851_s22 }
 0x159   : > { %1154 = vst [vmem:[#allocation1 + $0x10] ss:$2 sm:$0xff] %v4193_v12 }
 0x15b   : > { %v1159_v20 = vld.sshfl [vmem:[#allocation1] sm:$0xff pattern:$0x75316420]  ;;  %v1160_v21 = vld.sshfl [vmem:[#allocation1 + $0x8] sm:$0xff pattern:$0x75316420]  ;;  %v816_v23 = vpop.permute.xlu1 %815 }
 0x15c   : > { %1167 = vst [vmem:[#allocation1] ss:$2 sm:$0xff] %v1144_v19  ;;  %v899_v22 = vpop.permute.xlu0 %898  ;;  %v2345_v19 = vld [vmem:[#allocation2 + $0x20] sm:$0xf] }
 0x15d   : > { %901 = vst.msk [vmem:[#allocation2 + $0x1c] sm:$0xf] %vm288_vm6, %v899_v22 }
 0x15e   : > { %905 = vst.msk [vmem:[#allocation2 + $0x1c] sm:$0xf] %vm293_vm7, %v903_v24 }
 0x15f   : > { %818 = vst.msk [vmem:[#allocation2 + $0x18] sm:$0xf] %vm293_vm7, %v816_v23  ;;  %v1090_v25 = vld.sshfl [vmem:[#allocation1 + $0x20] sm:$0xff pattern:$0x75316420] }
 0x160   : > { %v1161_v26 = vld.sshfl [vmem:[#allocation1 + $0x10] sm:$0xff pattern:$0x75316420]  ;;  %v1162_v27 = vld.sshfl [vmem:[#allocation1 + $0x18] sm:$0xff pattern:$0x75316420]  ;;  %1104 = vrot.lane.b32.xlu1 %v1090_v25, %s3851_s22 }
 0x161   : > { %1173 = vrot.lane.b32.xlu2 %v1161_v26, %s3848_s14  ;;  %1576 = vst [vmem:[#allocation1 + $0x10] ss:$2 sm:$0xff] %v4193_v12  ;;  %1175 = vrot.lane.b32.xlu0 %v1162_v27, %s3848_s14  ;;  %v1091_v28 = vld.sshfl [vmem:[#allocation1 + $0x28] sm:$0xff pattern:$0x75316420] }
 0x162   : > { %1156 = vst [vmem:[#allocation1 + $0x20] ss:$2 sm:$0xff] %v4201_v17  ;;  %v2612_v27 = vld [vmem:[#allocation2 + $0x20] sm:$0xf] }
 0x163   : > { %v4216_v29 = vld.sshfl [vmem:[#allocation1] sm:$0xff pattern:$0x75316420] }
 0x164   : > { %1574 = vst [vmem:[#allocation1] ss:$2 sm:$0xff] %v4180_v62 }
 0x166   : > { %v4219_v30 = vld [vmem:[#allocation2 + $0x18] sm:$0xff] }
 0x167   : > { %1085 = vst [vmem:[#allocation1 + $0x30] ss:$2 sm:$0xff] %v4219_v30 }
 0x168   : > { %v1584_v31 = vld.sshfl [vmem:[#allocation1 + $0x18] sm:$0xff pattern:$0x75316420]  ;;  %v1583_v32 = vld.sshfl [vmem:[#allocation1 + $0x10] sm:$0xff pattern:$0x75316420] }
 0x169   : > { %1106 = vrot.lane.b32.xlu2 %v1091_v28, %s3851_s22  ;;  %v1163_v33 = vld.sshfl [vmem:[#allocation1 + $0x20] sm:$0xff pattern:$0x75316420]  ;;  %1112 = vrot.lane.b32.xlu0 %v1095_v13, %s3851_s22  ;;  %v1164_v34 = vld.sshfl [vmem:[#allocation1 + $0x28] sm:$0xff pattern:$0x75316420] }
 0x16a   : > { %1177 = vrot.lane.b32.xlu1 %v1163_v33, %s3848_s14  ;;  %1578 = vst [vmem:[#allocation1 + $0x20] ss:$2 sm:$0xff] %v4201_v17 }
 0x16b   : > { %1843 = vst [vmem:[#allocation1 + $0x10] ss:$2 sm:$0xff] %v4193_v12  ;;  %v4227_v35 = vld.sshfl [vmem:[#allocation1 + $0x8] sm:$0xff pattern:$0x75316420] }
 0x16c   : > { %v4229_v37 = vld.sshfl [vmem:[#allocation1] sm:$0xff pattern:$0x75316420] }
 0x16d   : > { %1589 = vst [vmem:[#allocation1] ss:$2 sm:$0xff] %v1568_v36 }
 0x16e   : > { %v1092_v38 = vld.sshfl [vmem:[#allocation1 + $0x30] sm:$0xff pattern:$0x75316420]  ;;  %v1093_v39 = vld.sshfl [vmem:[#allocation1 + $0x38] sm:$0xff pattern:$0x75316420] }
 0x16f   : > { %1158 = vst [vmem:[#allocation1 + $0x30] ss:$2 sm:$0xff] %v4219_v30 }
 0x171   : > { %1179 = vrot.lane.b32.xlu2 %v1164_v34, %s3848_s14  ;;  %1597 = vrot.lane.b32.xlu0 %v1584_v31, %s3852_s23  ;;  %v1585_v40 = vld.sshfl [vmem:[#allocation1 + $0x20] sm:$0xff pattern:$0x75316420]  ;;  %v1586_v41 = vld.sshfl [vmem:[#allocation1 + $0x28] sm:$0xff pattern:$0x75316420] }
 0x172   : > { %1108 = vrot.lane.b32.xlu1 %v1092_v38, %s3851_s22  ;;  %v4235_v42 = vld.sshfl [vmem:[#allocation1 + $0x10] sm:$0xff pattern:$0x75316420]  ;;  %v1851_v43 = vld.sshfl [vmem:[#allocation1 + $0x18] sm:$0xff pattern:$0x75316420] }
 0x173   : > { %2112 = vst [vmem:[#allocation1 + $0x10] ss:$2 sm:$0xff] %v4193_v12 }
 0x174   : > { %1845 = vst [vmem:[#allocation1 + $0x20] ss:$2 sm:$0xff] %v4201_v17  ;;  %v4239_v44 = vld.sshfl [vmem:[#allocation1] sm:$0xff pattern:$0x75316420] }
 0x175   : > { %1841 = vst [vmem:[#allocation1] ss:$2 sm:$0xff] %v4180_v62 }
 0x176   : > { %v1165_v45 = vld.sshfl [vmem:[#allocation1 + $0x30] sm:$0xff pattern:$0x75316420]  ;;  %v1166_v46 = vld.sshfl [vmem:[#allocation1 + $0x38] sm:$0xff pattern:$0x75316420] }
 0x177   : > { %1580 = vst [vmem:[#allocation1 + $0x30] ss:$2 sm:$0xff] %v4219_v30 }
 0x179   : > { %1110 = vrot.lane.b32.xlu2 %v1093_v39, %s3851_s22  ;;  %1171 = vrot.lane.b32.xlu0 %v1160_v21, %s3848_s14 }
 0x17a   : > { %1169 = vrot.lane.b32.xlu1 %v1159_v20, %s3848_s14  ;;  %v4246_v47 = vld.sshfl [vmem:[#allocation1 + $0x10] sm:$0xff pattern:$0x75316420]  ;;  %v2120_v48 = vld.sshfl [vmem:[#allocation1 + $0x18] sm:$0xff pattern:$0x75316420] }
 0x17b   : > { %2353 = vst [vmem:[#allocation1 + $0x10] ss:$2 sm:$0xff] %v4193_v12  ;;  %v1852_v0 = vld.sshfl [vmem:[#allocation1 + $0x20] sm:$0xff pattern:$0x75316420] }
 0x17c   : > { %v4249_v49 = vld.sshfl [vmem:[#allocation1 + $0x28] sm:$0xff pattern:$0x75316420]  ;;  %v4254_v51 = vld.sshfl [vmem:[#allocation1] sm:$0xff pattern:$0x75316420] }
 0x17d   : > { %v4251_v50 = vld.sshfl [vmem:[#allocation1 + $0x8] sm:$0xff pattern:$0x75316420]  ;;  %2114 = vst [vmem:[#allocation1 + $0x20] ss:$2 sm:$0xff] %v4201_v17 }
 0x17e   : > { %v1587_v52 = vld.sshfl [vmem:[#allocation1 + $0x30] sm:$0xff pattern:$0x75316420]  ;;  %v1588_v53 = vld.sshfl [vmem:[#allocation1 + $0x38] sm:$0xff pattern:$0x75316420] }
 0x17f   : > { %1847 = vst [vmem:[#allocation1 + $0x30] ss:$2 sm:$0xff] %v4219_v30 }
 0x180   : > { %1856 = vst [vmem:[#allocation1] ss:$2 sm:$0xff] %v1835_v54 }
 0x181   : > { %1595 = vrot.lane.b32.xlu2 %v1583_v32, %s3852_s23  ;;  %1864 = vrot.lane.b32.xlu0 %v1851_v43, %s3853_s25  ;;  %v2879_v32 = vld [vmem:[#allocation2 + $0x20] sm:$0xf] }
 0x182   : > { %1181 = vrot.lane.b32.xlu1 %v1165_v45, %s3848_s14  ;;  %v4260_v55 = vld.sshfl [vmem:[#allocation1 + $0x10] sm:$0xff pattern:$0x75316420]  ;;  %v2361_v56 = vld.sshfl [vmem:[#allocation1 + $0x18] sm:$0xff pattern:$0x75316420] }
 0x183   : > { %2620 = vst [vmem:[#allocation1 + $0x10] ss:$2 sm:$0xff] %v4193_v12 }
 0x184   : > { %v4263_v57 = vld.sshfl [vmem:[#allocation1 + $0x20] sm:$0xff pattern:$0x75316420]  ;;  %v4265_v58 = vld.sshfl [vmem:[#allocation1 + $0x28] sm:$0xff pattern:$0x75316420] }
 0x185   : > { %2355 = vst [vmem:[#allocation1 + $0x20] ss:$2 sm:$0xff] %v4201_v17 }
 0x186   : > { %v1854_v59 = vld.sshfl [vmem:[#allocation1 + $0x30] sm:$0xff pattern:$0x75316420]  ;;  %v4268_v1 = vld.sshfl [vmem:[#allocation1 + $0x38] sm:$0xff pattern:$0x75316420] }
 0x187   : > { %2116 = vst [vmem:[#allocation1 + $0x30] ss:$2 sm:$0xff] %v4219_v30  ;;  %v4271_v60 = vld.sshfl [vmem:[#allocation1] sm:$0xff pattern:$0x75316420] }
 0x188   : > { %2110 = vst [vmem:[#allocation1] ss:$2 sm:$0xff] %v4180_v62 }
 0x189   : > { %1183 = vrot.lane.b32.xlu2 %v1166_v46, %s3848_s14  ;;  %1185 = vrot.lane.b32.xlu0 %v4216_v29, %s3848_s14  ;;  %v4410_v46 = vld [vmem:[#allocation5 + $0x4] sm:$0xf] }
 0x18a   : > { %1599 = vrot.lane.b32.xlu1 %v1585_v40, %s3852_s23  ;;  %v4278_v61 = vld.sshfl [vmem:[#allocation1 + $0x10] sm:$0xff pattern:$0x75316420]  ;;  %v2628_v63 = vld.sshfl [vmem:[#allocation1 + $0x18] sm:$0xff pattern:$0x75316420] }
 0x18b   : > { %2889 = vst [vmem:[#allocation1 + $0x10] ss:$2 sm:$0xff] %v4193_v12 }
 0x18c   : > { %v4281_v2 = vld.sshfl [vmem:[#allocation1 + $0x20] sm:$0xff pattern:$0x75316420]  ;;  %v4283_v3 = vld.sshfl [vmem:[#allocation1 + $0x28] sm:$0xff pattern:$0x75316420] }
 0x18d   : > { %2622 = vst [vmem:[#allocation1 + $0x20] ss:$2 sm:$0xff] %v4201_v17 }
 0x18e   : > { %v2123_v5 = vld.sshfl [vmem:[#allocation1 + $0x30] sm:$0xff pattern:$0x75316420]  ;;  %v4286_v6 = vld.sshfl [vmem:[#allocation1 + $0x38] sm:$0xff pattern:$0x75316420] }
 0x18f   : > { %v4288_v7 = vld.sshfl [vmem:[#allocation1 + $0x8] sm:$0xff pattern:$0x75316420]  ;;  %v4290_v8 = vld.sshfl [vmem:[#allocation1] sm:$0xff pattern:$0x75316420] }
 0x190   : > { %2125 = vst [vmem:[#allocation1] ss:$2 sm:$0xff] %v2102_v4 }
 0x191   : > { %1601 = vrot.lane.b32.xlu2 %v1586_v41, %s3852_s23  ;;  %2133 = vrot.lane.b32.xlu0 %v2120_v48, %s3850_s21  ;;  %2357 = vst [vmem:[#allocation1 + $0x30] ss:$2 sm:$0xff] %v4219_v30  ;;  %v3122_v41 = vld [vmem:[#allocation2 + $0x20] sm:$0xf] }
 0x192   : > { %1603 = vrot.lane.b32.xlu1 %v1587_v52, %s3852_s23  ;;  %v4296_v9 = vld.sshfl [vmem:[#allocation1 + $0x10] sm:$0xff pattern:$0x75316420]  ;;  %v4298_v10 = vld.sshfl [vmem:[#allocation1 + $0x18] sm:$0xff pattern:$0x75316420] }
 0x193   : > { %3130 = vst [vmem:[#allocation1 + $0x10] ss:$2 sm:$0xff] %v4193_v12 }
 0x194   : > { %v4301_v11 = vld.sshfl [vmem:[#allocation1 + $0x20] sm:$0xff pattern:$0x75316420]  ;;  %v4303_v13 = vld.sshfl [vmem:[#allocation1 + $0x28] sm:$0xff pattern:$0x75316420] }
 0x195   : > { %2891 = vst [vmem:[#allocation1 + $0x20] ss:$2 sm:$0xff] %v4201_v17 }
 0x197   : > { %v4306_v14 = vld.sshfl [vmem:[#allocation1] sm:$0xff pattern:$0x75316420] }
 0x198   : > { %v4308_v15 = vld.sshfl [vmem:[#allocation1 + $0x30] sm:$0xff pattern:$0x75316420]  ;;  %2351 = vst [vmem:[#allocation1] ss:$2 sm:$0xff] %v4180_v62 }
 0x199   : > { %1862 = vrot.lane.b32.xlu2 %v4235_v42, %s3853_s25  ;;  %1593 = vrot.lane.b32.xlu0 %v4227_v35, %s3852_s23  ;;  %v4315_v16 = vld.sshfl [vmem:[#allocation1 + $0x38] sm:$0xff pattern:$0x75316420] }
 0x19a   : > { %1866 = vrot.lane.b32.xlu1 %v1852_v0, %s3853_s25  ;;  %2624 = vst [vmem:[#allocation1 + $0x30] ss:$2 sm:$0xff] %v4219_v30 }
 0x19c   : > { %v4319_v12 = vld.sshfl [vmem:[#allocation1 + $0x20] sm:$0xff pattern:$0x75316420]  ;;  %v4321_v18 = vld.sshfl [vmem:[#allocation1 + $0x28] sm:$0xff pattern:$0x75316420] }
 0x19d   : > { %3132 = vst [vmem:[#allocation1 + $0x20] ss:$2 sm:$0xff] %v4201_v17 }
 0x19f   : > { %v4324_v20 = vld.sshfl [vmem:[#allocation1 + $0x8] sm:$0xff pattern:$0x75316420]  ;;  %v4326_v21 = vld.sshfl [vmem:[#allocation1] sm:$0xff pattern:$0x75316420] }
 0x1a0   : > { %2366 = vst [vmem:[#allocation1] ss:$2 sm:$0xff] %v2345_v19 }
 0x1a1   : > { %1605 = vrot.lane.b32.xlu2 %v1588_v53, %s3852_s23  ;;  %2374 = vrot.lane.b32.xlu0 %v2361_v56, %s3854_s18  ;;  %v4330_v22 = vld.sshfl [vmem:[#allocation1 + $0x30] sm:$0xff pattern:$0x75316420]  ;;  %v4332_v23 = vld.sshfl [vmem:[#allocation1 + $0x38] sm:$0xff pattern:$0x75316420] }
 0x1a2   : > { %1591 = vrot.lane.b32.xlu1 %v4229_v37, %s3852_s23  ;;  %2893 = vst [vmem:[#allocation1 + $0x30] ss:$2 sm:$0xff] %v4219_v30 }
 0x1a7   : > { %v4337_v17 = vld.sshfl [vmem:[#allocation1] sm:$0xff pattern:$0x75316420] }
 0x1a8   : > { %2618 = vst [vmem:[#allocation1] ss:$2 sm:$0xff] %v4180_v62 }
 0x1a9   : > { %1868 = vrot.lane.b32.xlu2 %v4249_v49, %s3853_s25  ;;  %1607 = vrot.lane.b32.xlu0 %v4239_v44, %s3852_s23  ;;  %v4344_v24 = vld.sshfl [vmem:[#allocation1 + $0x38] sm:$0xff pattern:$0x75316420]  ;;  %v4346_v25 = vld.sshfl [vmem:[#allocation1 + $0x30] sm:$0xff pattern:$0x75316420] }
 0x1aa   : > { %1870 = vrot.lane.b32.xlu1 %v1854_v59, %s3853_s25  ;;  %3134 = vst [vmem:[#allocation1 + $0x30] ss:$2 sm:$0xff] %v4219_v30 }
 0x1af   : > { %v4350_v26 = vld.sshfl [vmem:[#allocation1 + $0x8] sm:$0xff pattern:$0x75316420]  ;;  %v4352_v28 = vld.sshfl [vmem:[#allocation1] sm:$0xff pattern:$0x75316420] }
 0x1b0   : > { %v4357_v29 = vpop.permute.xlu2 %1100  ;;  %2633 = vst [vmem:[#allocation1] ss:$2 sm:$0xff] %v2612_v27 }
 0x1b1   : > { %2131 = vrot.lane.b32.xlu2 %v4246_v47, %s3850_s21  ;;  %2641 = vrot.lane.b32.xlu0 %v2628_v63, %s3855_s26 }
 0x1b2   : > { %2135 = vrot.lane.b32.xlu1 %v4263_v57, %s3850_s21  ;;  %v4377_v35 = vpop.permute.xlu0 %1098  ;;  %v1097_v38 = vpop.permute.xlu1 %1096 }
 0x1b7   : > { %v4361_v31 = vld.sshfl [vmem:[#allocation1] sm:$0xff pattern:$0x75316420] }
 0x1b8   : > { %2887 = vst [vmem:[#allocation1] ss:$2 sm:$0xff] %v4180_v62 }
 0x1b9   : > { %1872 = vrot.lane.b32.xlu2 %v4268_v1, %s3853_s25  ;;  %1860 = vrot.lane.b32.xlu0 %v4251_v50, %s3853_s25 }
 0x1ba   : > { %2139 = vrot.lane.b32.xlu1 %v2123_v5, %s3850_s21 }
 0x1bb   : > { %v1174_v30 = vpop.permute.xlu2 %1173 }
 0x1bf   : > { %v4369_v33 = vld.sshfl [vmem:[#allocation1 + $0x8] sm:$0xff pattern:$0x75316420]  ;;  %v4371_v34 = vld.sshfl [vmem:[#allocation1] sm:$0xff pattern:$0x75316420] }
 0x1c0   : > { %2902 = vst [vmem:[#allocation1] ss:$2 sm:$0xff] %v2879_v32  ;;  %v5176_v32 = vmov 0 }
 0x1c1   : > { %2137 = vrot.lane.b32.xlu2 %v4265_v58, %s3850_s21  ;;  %1874 = vrot.lane.b32.xlu0 %v4271_v60, %s3853_s25 }
 0x1c2   : > { %2376 = vrot.lane.b32.xlu1 %v4281_v2, %s3854_s18  ;;  %v1115_v2 = vsel %vm1114_vm11, %v1097_v38, %v4377_v35 }
 0x1c3   : > { %v4381_v36 = vpop.permute.xlu2 %1106 }
 0x1c7   : > { %v4383_v37 = vld.sshfl [vmem:[#allocation1] sm:$0xff pattern:$0x75316420] }
 0x1c8   : > { %3128 = vst [vmem:[#allocation1] ss:$2 sm:$0xff] %v4180_v62 }
 0x1c9   : > { %2372 = vrot.lane.b32.xlu2 %v4260_v55, %s3854_s18  ;;  %2129 = vrot.lane.b32.xlu0 %v4288_v7, %s3850_s21 }
 0x1ca   : > { %1858 = vrot.lane.b32.xlu1 %v4254_v51, %s3853_s25  ;;  %v4392_v39 = vpop.permute.xlu0 %1102  ;;  %v948_v51 = vlaneseq }
 0x1cb   : > { %v4394_v40 = vpop.permute.xlu2 %1179  ;;  %v1117_v27 = vsel %vm1114_vm11, %v4357_v29, %v4392_v39 }
 0x1cc   : > { %v4440_v55 = vand.u32 127, %v948_v51 }
 0x1ce   : > { %v961_v56 = vand.u32 31, %v4440_v55  ;;  %v4452_v59 = vadd.s32 128, %v4440_v55  ;;  %v4455_v1 = vadd.s32 256, %v4440_v55  ;;  %v4472_v5 = vadd.s32 640, %v4440_v55 }
 0x1cf   : > { %v4396_v42 = vld.sshfl [vmem:[#allocation1 + $0x8] sm:$0xff pattern:$0x75316420]  ;;  %v4398_v43 = vld.sshfl [vmem:[#allocation1] sm:$0xff pattern:$0x75316420] }
 0x1d0   : > { %3143 = vst [vmem:[#allocation1] ss:$2 sm:$0xff] %v3122_v41  ;;  %vm4460_vm12 = vcmp.ge.s32.totalorder %v961_v56, 1  ;;  %v952_v19 = vadd.s32 384, %v4440_v55 }
 0x1d1   : > { %2141 = vrot.lane.b32.xlu2 %v4286_v6, %s3850_s21  ;;  %2910 = vrot.lane.b32.xlu0 %v4298_v10, %s3849_s15  ;;  %v4475_v6 = vadd.s32 768, %v4440_v55  ;;  %v1131_v10 = vsel %vm4460_vm12, %v1115_v2, 0.0 }
 0x1d2   : > { %2380 = vrot.lane.b32.xlu1 %v4308_v15, %s3854_s18  ;;  %v4406_v62 = vpop.permute.xlu1 %1104  ;;  %v996_v15 = vand.u32 31, %v4472_v5  ;;  %v982_v51 = vand.u32 31, %v952_v19 }
 0x1d3   : > { %v4408_v44 = vpop.permute.xlu2 %1110  ;;  %v1176_v45 = vpop.permute.xlu0 %1175  ;;  %v1119_v38 = vsel %vm1114_vm11, %v4406_v62, %v4381_v36 }
 0x1d4   : > { %v1190_v47 = vsel %vm1187_vm8, %v1174_v30, %v1176_v45  ;;  %vm4538_vm0 = vcmp.ge.s32.totalorder %v996_v15, 1  ;;  %vm4576_vm3 = vcmp.ge.s32.totalorder %v982_v51, 1  ;;  %vm4623_vm6 = vcmp.le.s32.totalorder %v982_v51, 30 }
 0x1d5   : > { %3532 = vmatpush.msk.msra.mxu2 %vm5148_vm9, %v1190_v47 }
 0x1d6   : > { %3533 = vmatmul.msk.f32.vlgmr.msra.gmra.mxu2 %vm5149_vm10, %v4410_v46 }
 0x1d9   : > { %2378 = vrot.lane.b32.xlu2 %v4283_v3, %s3854_s18  ;;  %2143 = vrot.lane.b32.xlu0 %v4306_v14, %s3850_s21  ;;  %v4467_v3 = vadd.s32 512, %v4440_v55 }
 0x1da   : > { %2643 = vrot.lane.b32.xlu1 %v4301_v11, %s3855_s26  ;;  %v975_v11 = vand.u32 31, %v4455_v1 }
 0x1db   : > { %v4422_v48 = vpop.permute.xlu2 %1595  ;;  %v4424_v0 = vpop.permute.xlu0 %1112  ;;  %v989_v14 = vand.u32 31, %v4467_v3 }
 0x1dc   : > { %v1178_v49 = vpop.permute.xlu1 %1177  ;;  %vm4516_vm14 = vcmp.ge.s32.totalorder %v975_v11, 1  ;;  %vm4598_vm5 = vcmp.le.s32.totalorder %v975_v11, 30 }
 0x1dd   : > { %v1191_v50 = vsel %vm1187_vm8, %v1176_v45, %v1178_v49  ;;  %v1192_v7 = vsel %vm1187_vm8, %v1178_v49, %v4394_v40  ;;  %vm4525_vm15 = vcmp.ge.s32.totalorder %v989_v14, 1 }
 0x1de   : > { %3534 = vmatpush.msk.msra.mxu3 %vm5148_vm9, %v1191_v50  ;;  %v5177_v32 = vsel %vm4525_vm15, 4294967295, %v5176_v32  ;;  %v1133_v50 = vsel %vm4516_vm14, %v1117_v27, 0.0 }
 0x1df   : > { %3535 = vmatmul.msk.f32.vlgmr.msra.gmra.mxu3 %vm5149_vm10, %v4410_v46 }
 0x1e1   : > { %2639 = vrot.lane.b32.xlu2 %v4278_v61, %s3855_s26  ;;  %2370 = vrot.lane.b32.xlu0 %v4324_v20, %s3854_s18  ;;  %v4501_v20 = vadd.s32 896, %v4440_v55 }
 0x1e2   : > { %2127 = vrot.lane.b32.xlu1 %v4290_v8, %s3850_s21  ;;  %v968_v8 = vand.u32 31, %v4452_v59 }
 0x1e3   : > { %v4436_v52 = vpop.permute.xlu2 %1183  ;;  %v4438_v53 = vpop.permute.xlu0 %1597 }
 0x1e4   : > { %v1109_v54 = vpop.permute.xlu1 %1108  ;;  %vm4509_vm13 = vcmp.ge.s32.totalorder %v968_v8, 1  ;;  %v1612_v19 = vsel %vm5144_vm2, %v4422_v48, %v4438_v53 }
 0x1e5   : > { %v1120_v47 = vsel %vm1114_vm11, %v4381_v36, %v1109_v54  ;;  %v1135_v36 = vsel %vm4525_vm15, %v1119_v38, 0.0  ;;  %v1628_v11 = vsel %vm4598_vm5, %v1612_v19, 0.0 }
 0x1e9   : > { %2382 = vrot.lane.b32.xlu2 %v4315_v16, %s3854_s18  ;;  %2384 = vrot.lane.b32.xlu0 %v4337_v17, %s3854_s18  ;;  %v1003_v16 = vand.u32 31, %v4475_v6  ;;  %v5194_v6 = vmov 0 }
 0x1ea   : > { %2647 = vrot.lane.b32.xlu1 %v4330_v22, %s3855_s26 }
 0x1eb   : > { %v4449_v57 = vpop.permute.xlu2 %1601  ;;  %v1172_v58 = vpop.permute.xlu0 %1171  ;;  %vm4544_vm1 = vcmp.ge.s32.totalorder %v1003_v16, 1  ;;  %vm4637_vm7 = vcmp.le.s32.totalorder %v1003_v16, 30 }
 0x1ec   : > { %v1189_v60 = vsel %vm1187_vm8, %v1172_v58, %v1174_v30  ;;  %v1170_v61 = vpop.permute.xlu1 %1169 }
 0x1ed   : > { %v1188_v4 = vsel %vm1187_vm8, %v1170_v61, %v1172_v58  ;;  %3530 = vmatpush.msk.msra.mxu1 %vm5148_vm9, %v1189_v60  ;;  %v1010_v58 = vand.u32 31, %v4501_v20  ;;  %v1118_v61 = vsel %vm1114_vm11, %v4392_v39, %v4406_v62  ;;  %v1122_v39 = vsel %vm1114_vm11, %v4408_v44, %v4424_v0 }
 0x1ee   : > { %3528 = vmatpush.msk.msra.mxu0 %vm5148_vm9, %v1188_v4  ;;  %3531 = vmatmul.msk.f32.vlgmr.msra.gmra.mxu1 %vm5149_vm10, %v4410_v46  ;;  %v3138_v4 = vld.sshfl [vmem:[#allocation1 + $0x18] sm:$0xff pattern:$0x75316420]  ;;  %v5186_v62 = vmov 0 }
 0x1ef   : > { %3529 = vmatmul.msk.f32.vlgmr.msra.gmra.mxu0 %vm5149_vm10, %v4410_v46  ;;  %vm4585_vm4 = vcmp.ge.s32.totalorder %v1010_v58, 1  ;;  %v5187_v62 = vsel %vm4598_vm5, 4294967295, %v5186_v62 }
 0x1f0   : > { %3536 = vmatpush.msk.msrb.mxu0 %vm5148_vm9, %v1192_v7  ;;  %v1138_v0 = vsel %vm4585_vm4, %v1122_v39, 0.0  ;;  %v3144_v39 = vld.sshfl [vmem:[#allocation1] sm:$0xff pattern:$0x75316420] }
 0x1f1   : > { %2649 = vrot.lane.b32.xlu2 %v4332_v23, %s3855_s26  ;;  %2637 = vrot.lane.b32.xlu0 %v4350_v26, %s3855_s26  ;;  %v5174_v26 = vmov 0 }
 0x1f2   : > { %3544 = vmatpush.msk.msra.mxu0 %vm5148_vm9, %v1131_v10  ;;  %2368 = vrot.lane.b32.xlu1 %v4326_v21, %s3854_s18  ;;  %v1116_v21 = vsel %vm1114_vm11, %v4377_v35, %v4357_v29  ;;  %v5175_v26 = vsel %vm4516_vm14, 4294967295, %v5174_v26 }
 0x1f3   : > { %v4503_v22 = vpop.permute.xlu2 %1862  ;;  %v4505_v17 = vpop.permute.xlu0 %1864  ;;  %v1132_v49 = vsel %vm4509_vm13, %v1116_v21, 0.0  ;;  %v1139_v21 = vld [vmem:[#allocation5] sm:$0xf] }
 0x1f4   : > { %v1182_v30 = vpop.permute.xlu1 %1181 }
 0x1f5   : > { %v1193_v35 = vsel %vm1187_vm8, %v4394_v40, %v1182_v30  ;;  %v1194_v41 = vsel %vm1187_vm8, %v1182_v30, %v4436_v52  ;;  %v1121_v40 = vsel %vm1114_vm11, %v1109_v54, %v4408_v44  ;;  %v1136_v54 = vsel %vm4538_vm0, %v1120_v47, 0.0  ;;  %v1635_v47 = vld [vmem:[#allocation5 + $0x8] sm:$0xf] }
 0x1f6   : > { %3538 = vmatpush.msk.msrb.mxu1 %vm5148_vm9, %v1193_v35  ;;  %3540 = vmatpush.msk.msrb.mxu2 %vm5148_vm9, %v1194_v41  ;;  %v1137_v1 = vsel %vm4544_vm1, %v1121_v40, 0.0  ;;  %v1134_v44 = vsel %vm4576_vm3, %v1118_v61, 0.0  ;;  %v5190_v30 = vmov 0  ;;  %vm4659_vm11 = vcmp.le.s32.totalorder %v968_v8, 30 }
 0x1f7   : > { %3537 = vmatmul.msk.f32.vlgmr.msrb.gmra.mxu0 %vm5149_vm10, %v4410_v46  ;;  %3541 = vmatmul.msk.f32.vlgmr.msrb.gmra.mxu2 %vm5149_vm10, %v4410_v46  ;;  %v5191_v30 = vsel %vm4637_vm7, 4294967295, %v5190_v30 }
 0x1f8   : > { %3546 = vmatpush.msk.msra.mxu1 %vm5148_vm9, %v1132_v49  ;;  %3548 = vmatpush.msk.msra.mxu2 %vm5148_vm9, %v1133_v50  ;;  %v5197_v49 = vmov 0  ;;  %v5199_v50 = vmov 0 }
 0x1f9   : > { %3552 = vmatpush.msk.msrb.mxu0 %vm5148_vm9, %v1135_v36  ;;  %3539 = vmatmul.msk.f32.vlgmr.msrb.gmra.mxu1 %vm5149_vm10, %v4410_v46 }
 0x1fa   : > { %3554 = vmatpush.msk.msrb.mxu1 %vm5148_vm9, %v1136_v54  ;;  %3556 = vmatpush.msk.msrb.mxu2 %vm5148_vm9, %v1137_v1 }
 0x1fb   : > { %2645 = vrot.lane.b32.xlu2 %v4303_v13, %s3855_s26  ;;  %2912 = vrot.lane.b32.xlu1 %v4319_v12, %s3849_s15  ;;  %v4593_v7 = vpop.permute.xlu2 %1605  ;;  %v1186_v10 = vpop.permute.xlu0 %1185 }
 0x1fc   : > { %3151 = vrot.lane.b32.xlu0 %v3138_v4, %s3856_s28  ;;  %v1600_v13 = vpop.permute.xlu1 %1599  ;;  %v1195_v12 = vsel %vm1187_vm8, %v4436_v52, %v1186_v10  ;;  %vm5147_vm8 = vcmask 531456  }
 0x1fd   : > { %3542 = vmatpush.msk.msrb.mxu3 %vm5148_vm9, %v1195_v12  ;;  %v1613_v52 = vsel %vm5144_vm2, %v4438_v53, %v1600_v13  ;;  %v1879_v5 = vsel %vm5147_vm8, %v4503_v22, %v4505_v17  ;;  %vm4714_vm8 = vcmp.le.s32.totalorder %v989_v14, 30 }
 0x1fe   : > { %3543 = vmatmul.msk.f32.vlgmr.msrb.gmra.mxu3 %vm5149_vm10, %v4410_v46  ;;  %v5188_v46 = vmov 0  ;;  %v1895_v40 = vsel %vm4516_vm14, %v1879_v5, 0.0  ;;  %v5200_v50 = vsel %vm4714_vm8, 4294967295, %v5199_v50 }
 0x1ff   : > { %3549 = vmatmul.msk.f32.vlgmr.msra.gmra.mxu2 %vm5149_vm10, %v1139_v21  ;;  %3550 = vmatpush.msk.msra.mxu3 %vm5148_vm9, %v1134_v44  ;;  %v5189_v46 = vsel %vm4623_vm6, 4294967295, %v5188_v46  ;;  %v3141_v44 = vld.sshfl [vmem:[#allocation1 + $0x30] sm:$0xff pattern:$0x75316420] }
 0x200   : > { %3564 = vmatpush.msk.msra.mxu2 %vm5148_vm9, %v1628_v11  ;;  %3545 = vmatmul.msk.f32.vlgmr.msra.gmra.mxu0 %vm5149_vm10, %v1139_v21 }
 0x201   : > { %3558 = vmatpush.msk.msrb.mxu3 %vm5148_vm9, %v1138_v0  ;;  %3547 = vmatmul.msk.f32.vlgmr.msra.gmra.mxu1 %vm5149_vm10, %v1139_v21 }
 0x203   : > { %2908 = vrot.lane.b32.xlu2 %v4296_v9, %s3849_s15  ;;  %2635 = vrot.lane.b32.xlu1 %v4352_v28, %s3855_s26  ;;  %v4633_v27 = vpop.permute.xlu2 %1868  ;;  %v4641_v38 = vpop.permute.xlu0 %2133  ;;  %v1629_v28 = vsel %vm4623_vm6, %v1613_v52, 0.0  ;;  %vm5196_vm6 = vcmask 777216  }
 0x204   : > { %2651 = vrot.lane.b32.xlu0 %v4361_v31, %s3855_s26  ;;  %v1604_v53 = vpop.permute.xlu1 %1603  ;;  %v5192_v31 = vmov 0 }
 0x205   : > { %v1616_v9 = vsel %vm5144_vm2, %v1604_v53, %v4593_v7  ;;  %v5193_v31 = vsel %vm4659_vm11, 4294967295, %v5192_v31  ;;  %vm4665_vm2 = vcmp.le.s32.totalorder %v996_v15, 30  ;;  %v1615_v16 = vsel %vm5196_vm6, %v4449_v57, %v1604_v53 }
 0x206   : > { %v1632_v35 = vsel %vm4637_vm7, %v1616_v9, 0.0  ;;  %3551 = vmatmul.msk.f32.vlgmr.msra.gmra.mxu3 %vm5149_vm10, %v1139_v21  ;;  %v5195_v6 = vsel %vm4665_vm2, 4294967295, %v5194_v6 }
 0x207   : > { %3557 = vmatmul.msk.f32.vlgmr.msrb.gmra.mxu2 %vm5149_vm10, %v1139_v21  ;;  %3566 = vmatpush.msk.msra.mxu3 %vm5148_vm9, %v1629_v28  ;;  %v4796_v28 = vld [vmem:[#allocation5 + $0x10] sm:$0xf] }
 0x208   : > { %3572 = vmatpush.msk.msrb.mxu2 %vm5148_vm9, %v1632_v35  ;;  %3553 = vmatmul.msk.f32.vlgmr.msrb.gmra.mxu0 %vm5149_vm10, %v1139_v21 }
 0x209   : > { %3555 = vmatmul.msk.f32.vlgmr.msrb.gmra.mxu1 %vm5149_vm10, %v1139_v21 }
 0x20b   : > { %2918 = vrot.lane.b32.xlu2 %v4344_v24, %s3849_s15  ;;  %2916 = vrot.lane.b32.xlu1 %v4346_v25, %s3849_s15  ;;  %v4675_v59 = vpop.permute.xlu2 %2131  ;;  %v1594_v8 = vpop.permute.xlu0 %1593  ;;  %v1631_v25 = vsel %vm4665_vm2, %v1615_v16, 0.0  ;;  %vm5203_vm2 = vcmask 31744  }
 0x20c   : > { %2906 = vrot.lane.b32.xlu0 %v4369_v33, %s3849_s15  ;;  %v4682_v15 = vpop.permute.xlu1 %1866  ;;  %v1611_v41 = vsel %vm5196_vm6, %v1594_v8, %v4422_v48  ;;  %vm4708_vm6 = vcmp.le.s32.totalorder %v961_v56, 30  ;;  %vm5205_vm14 = vmmov %vm5203_vm2 }
 0x20d   : > { %v1627_v24 = vsel %vm4659_vm11, %v1611_v41, 0.0  ;;  %v5198_v49 = vsel %vm4708_vm6, 4294967295, %v5197_v49  ;;  %vm5204_vm11 = vcmask 1043456   ;;  %vm5208_vm15 = vmmov %vm5203_vm2 }
 0x20e   : > { %3562 = vmatpush.msk.msra.mxu1 %vm5148_vm9, %v1627_v24  ;;  %3559 = vmatmul.msk.f32.vlgmr.msrb.gmra.mxu3 %vm5149_vm10, %v1139_v21  ;;  %vm5206_vm7 = vmmov %vm5204_vm11  ;;  %v3140_v21 = vld.sshfl [vmem:[#allocation1 + $0x28] sm:$0xff pattern:$0x75316420] }
 0x20f   : > { %3565 = vmatmul.msk.f32.vlgmr.msra.gmra.mxu2 %vm5149_vm10, %v1635_v47 }
 0x210   : > { %3570 = vmatpush.msk.msrb.mxu1 %vm5148_vm9, %v1631_v25  ;;  %3580 = vmatpush.msk.msra.mxu2 %vm5148_vm9, %v1895_v40  ;;  %vm5201_vm9 = vcmask 777216  }
 0x211   : > { %3563 = vmatmul.msk.f32.vlgmr.msra.gmra.mxu1 %vm5149_vm10, %v1635_v47  ;;  %vm5202_vm10 = vmmov %vm5201_vm9 }
 0x213   : > { %2914 = vrot.lane.b32.xlu2 %v4321_v18, %s3849_s15  ;;  %2904 = vrot.lane.b32.xlu1 %v4371_v34, %s3849_s15  ;;  %v4702_v33 = vpop.permute.xlu2 %1872  ;;  %v4704_v48 = vpop.permute.xlu0 %2374  ;;  %v1614_v18 = vsel %vm5201_vm9, %v1600_v13, %v4449_v57  ;;  %v3137_v57 = vld.sshfl [vmem:[#allocation1 + $0x10] sm:$0xff pattern:$0x75316420]  ;;  %vm5207_vm9 = vmmov %vm5203_vm2 }
 0x214   : > { %2920 = vrot.lane.b32.xlu0 %v4383_v37, %s3849_s15  ;;  %v1592_v34 = vpop.permute.xlu1 %1591  ;;  %v1630_v56 = vsel %vm4714_vm8, %v1614_v18, 0.0  ;;  %v3139_v37 = vld.sshfl [vmem:[#allocation1 + $0x20] sm:$0xff pattern:$0x75316420] }
 0x215   : > { %v1610_v51 = vsel %vm5202_vm10, %v1592_v34, %v1594_v8  ;;  %vm4735_vm10 = vcmp.le.s32.totalorder %v1010_v58, 30  ;;  %v4750_v58 = vld [vmem:[#allocation5 + $0xc] sm:$0xf] }
 0x216   : > { %v1626_v55 = vsel %vm4708_vm6, %v1610_v51, 0.0  ;;  %3567 = vmatmul.msk.f32.vlgmr.msra.gmra.mxu3 %vm5203_vm2, %v1635_v47  ;;  %vm5164_vm2 = vcmask 523264   ;;  %vm5218_vm6 = vmmov %vm5207_vm9 }
 0x217   : > { %3560 = vmatpush.msk.msra.mxu0 %vm5204_vm11, %v1626_v55  ;;  %3573 = vmatmul.msk.f32.vlgmr.msrb.gmra.mxu2 %vm5205_vm14, %v1635_v47  ;;  %vm5211_vm14 = vcmask 531456   ;;  %v4837_v55 = vld [vmem:[#allocation5 + $0x14] sm:$0xf] }
 0x218   : > { %3561 = vmatmul.msk.f32.vlgmr.msra.gmra.mxu0 %vm5207_vm9, %v1635_v47  ;;  %v1880_v54 = vsel %vm5211_vm14, %v4505_v17, %v4682_v15  ;;  %v2148_v17 = vsel %vm5164_vm2, %v4675_v59, %v4641_v38 }
 0x219   : > { %3568 = vmatpush.msk.msrb.mxu0 %vm5206_vm7, %v1630_v56  ;;  %3571 = vmatmul.msk.f32.vlgmr.msrb.gmra.mxu1 %vm5208_vm15, %v1635_v47  ;;  %vm5212_vm15 = vcmask 777216   ;;  %vm5213_vm7 = vmmov %vm5211_vm14 }
 0x21a   : > { %vm5214_vm14 = vmmov %vm5207_vm9 }
 0x21b   : > { %3149 = vrot.lane.b32.xlu2 %v3137_v57, %s3856_s28  ;;  %3153 = vrot.lane.b32.xlu1 %v3139_v37, %s3856_s28  ;;  %v4741_v14 = vpop.permute.xlu2 %2137  ;;  %v1608_v36 = vpop.permute.xlu0 %1607 }
 0x21c   : > { %3147 = vrot.lane.b32.xlu0 %v4396_v42, %s3856_s28  ;;  %v1871_v1 = vpop.permute.xlu1 %1870  ;;  %v1617_v20 = vsel %vm5212_vm15, %v4593_v7, %v1608_v36  ;;  %v1896_v42 = vsel %vm4576_vm3, %v1880_v54, 0.0  ;;  %vm5215_vm15 = vmmov %vm5204_vm11  ;;  %v3142_v7 = vld.sshfl [vmem:[#allocation1 + $0x38] sm:$0xff pattern:$0x75316420] }
 0x21d   : > { %v1883_v61 = vsel %vm5213_vm7, %v1871_v1, %v4702_v33  ;;  %v1633_v4 = vsel %vm4735_vm10, %v1617_v20, 0.0  ;;  %vm5216_vm7 = vmmov %vm5204_vm11 }
 0x21e   : > { %v1899_v10 = vsel %vm4544_vm1, %v1883_v61, 0.0  ;;  %3574 = vmatpush.msk.msrb.mxu3 %vm5204_vm11, %v1633_v4  ;;  %vm5217_vm8 = vmmov %vm5216_vm7 }
 0x21f   : > { %3581 = vmatmul.msk.f32.vlgmr.msra.gmra.mxu2 %vm5207_vm9, %v4750_v58  ;;  %3575 = vmatmul.msk.f32.vlgmr.msrb.gmra.mxu3 %vm5214_vm14, %v1635_v47  ;;  %vm5219_vm11 = vmmov %vm5218_vm6  ;;  %vm5221_vm9 = vcmask 531456  }
 0x220   : > { %3588 = vmatpush.msk.msrb.mxu2 %vm5215_vm15, %v1899_v10  ;;  %3582 = vmatpush.msk.msra.mxu3 %vm5216_vm7, %v1896_v42  ;;  %v1882_v11 = vsel %vm5221_vm9, %v4633_v27, %v1871_v1  ;;  %vm5222_vm14 = vmmov %vm5221_vm9 }
 0x221   : > { %3569 = vmatmul.msk.f32.vlgmr.msrb.gmra.mxu0 %vm5218_vm6, %v1635_v47  ;;  %vm5223_vm15 = vmmov %vm5216_vm7  ;;  %v1898_v8 = vsel %vm4538_vm0, %v1882_v11, 0.0 }
 0x222   : > { %3596 = vmatpush.msk.msra.mxu2 %vm5217_vm8, %v2148_v17  ;;  %vm5220_vm8 = vmmov %vm5218_vm6  ;;  %vm5163_vm6 = vcmask 515072  }
 0x223   : > { %3159 = vrot.lane.b32.xlu2 %v3142_v7, %s3856_s28  ;;  %3145 = vrot.lane.b32.xlu1 %v4398_v43, %s3856_s28  ;;  %v4774_v19 = vpop.permute.xlu2 %2372  ;;  %v4776_v13 = vpop.permute.xlu0 %2641  ;;  %vm5225_vm9 = vmmov %vm5216_vm7  ;;  %v4893_v7 = vld [vmem:[#allocation5 + $0x18] sm:$0xf] }
 0x224   : > { %3161 = vrot.lane.b32.xlu0 %v3144_v39, %s3856_s28  ;;  %v4779_v12 = vpop.permute.xlu1 %2135  ;;  %v2389_v52 = vsel %vm5163_vm6, %v4774_v19, %v4704_v48  ;;  %vm5236_vm6 = vnez %v5177_v32  ;;  %v3385_v32 = vld [vmem:[%s5142_s3] sm:$0xf] }
 0x225   : > { %v2405_v5 = vsel %vm4598_vm5, %v2389_v52, 0.0  ;;  %v2149_v40 = vsel %vm5164_vm2, %v4641_v38, %v4779_v12 }
 0x227   : > { %3589 = vmatmul.msk.f32.vlgmr.msrb.gmra.mxu2 %vm5219_vm11, %v4750_v58  ;;  %3583 = vmatmul.msk.f32.vlgmr.msra.gmra.mxu3 %vm5220_vm8, %v4750_v58  ;;  %vm5224_vm11 = vmmov %vm5220_vm8 }
 0x22b   : > { %3155 = vrot.lane.b32.xlu2 %v3140_v21, %s3856_s28  ;;  %3157 = vrot.lane.b32.xlu1 %v3141_v44, %s3856_s28  ;;  %v4787_v43 = vpop.permute.xlu2 %2141  ;;  %v1861_v0 = vpop.permute.xlu0 %1860 }
 0x22c   : > { %v2140_v53 = vpop.permute.xlu1 %2139  ;;  %v1878_v9 = vsel %vm5222_vm14, %v1861_v0, %v4503_v22  ;;  %vm5226_vm14 = vmmov %vm5216_vm7 }
 0x22d   : > { %v2152_v35 = vsel %vm5164_vm2, %v2140_v53, %v4787_v43  ;;  %v1894_v16 = vsel %vm4509_vm13, %v1878_v9, 0.0  ;;  %v2151_v38 = vsel %vm5164_vm2, %v4741_v14, %v2140_v53 }
 0x22e   : > { %3604 = vmatpush.msk.msrb.mxu2 %vm5223_vm15, %v2152_v35  ;;  %3578 = vmatpush.msk.msra.mxu1 %vm5216_vm7, %v1894_v16  ;;  %vm5227_vm15 = vcmask 531456  }
 0x22f   : > { %3597 = vmatmul.msk.f32.vlgmr.msra.gmra.mxu2 %vm5224_vm11, %v4796_v28  ;;  %3579 = vmatmul.msk.f32.vlgmr.msra.gmra.mxu1 %vm5220_vm8, %v4750_v58  ;;  %vm5228_vm11 = vmmov %vm5220_vm8  ;;  %v1881_v56 = vsel %vm5227_vm15, %v4682_v15, %v4633_v27 }
 0x230   : > { %3612 = vmatpush.msk.msra.mxu2 %vm5225_vm9, %v2405_v5  ;;  %3586 = vmatpush.msk.msrb.mxu1 %vm5226_vm14, %v1898_v8  ;;  %vm5229_vm9 = vmmov %vm5220_vm8  ;;  %v1897_v27 = vsel %vm5236_vm6, %v1881_v56, 0.0 }
 0x231   : > { %vm5230_vm14 = vmmov %vm5216_vm7 }
 0x233   : > { %v4814_v22 = vpop.permute.xlu2 %2378  ;;  %v1875_v41 = vpop.permute.xlu0 %1874 }
 0x234   : > { %v4816_v47 = vpop.permute.xlu1 %2376  ;;  %v1884_v24 = vsel %vm5227_vm15, %v4702_v33, %v1875_v41 }
 0x235   : > { %v1900_v25 = vsel %vm4585_vm4, %v1884_v24, 0.0 }
 0x236   : > { %3590 = vmatpush.msk.msrb.mxu3 %vm5216_vm7, %v1900_v25  ;;  %vm5231_vm7 = vmmov %vm5227_vm15 }
 0x237   : > { %3605 = vmatmul.msk.f32.vlgmr.msrb.gmra.mxu2 %vm5228_vm11, %v4796_v28  ;;  %3587 = vmatmul.msk.f32.vlgmr.msrb.gmra.mxu1 %vm5220_vm8, %v4750_v58  ;;  %vm5232_vm11 = vmmov %vm5230_vm14 }
 0x238   : > { %3591 = vmatmul.msk.f32.vlgmr.msrb.gmra.mxu3 %vm5229_vm9, %v4750_v58  ;;  %vm5233_vm8 = vmmov %vm5232_vm11 }
 0x239   : > { %3598 = vmatpush.msk.msra.mxu3 %vm5230_vm14, %v2149_v40  ;;  %vm5234_vm9 = vmmov %vm5233_vm8  ;;  %vm5235_vm14 = vcmask 31744  }
 0x23a   : > { %vm5237_vm15 = vmmov %vm5235_vm14 }
 0x23b   : > { %v4833_v33 = vpop.permute.xlu2 %2639  ;;  %v2130_v18 = vpop.permute.xlu0 %2129 }
 0x23c   : > { %v1859_v34 = vpop.permute.xlu1 %1858  ;;  %v2147_v51 = vsel %vm5164_vm2, %v2130_v18, %v4675_v59 }
 0x23d   : > { %v1877_v57 = vsel %vm5231_vm7, %v1859_v34, %v1861_v0  ;;  %3594 = vmatpush.msk.msra.mxu1 %vm5232_vm11, %v2147_v51  ;;  %vm5238_vm7 = vmmov %vm5235_vm14 }
 0x23e   : > { %v1893_v37 = vsel %vm4460_vm12, %v1877_v57, 0.0  ;;  %vm5239_vm11 = vmmov %vm5233_vm8 }
 0x23f   : > { %3602 = vmatpush.msk.msrb.mxu1 %vm5233_vm8, %v2151_v38  ;;  %3576 = vmatpush.msk.msra.mxu0 %vm5234_vm9, %v1893_v37  ;;  %vm5240_vm2 = vmmov %vm5238_vm7  ;;  %vm5166_vm8 = vcmask 269312   ;;  %vm5241_vm9 = vcmask 515072  }
 0x240   : > { %3613 = vmatmul.msk.f32.vlgmr.msra.gmra.mxu2 %vm5235_vm14, %v4837_v55  ;;  %3577 = vmatmul.msk.f32.vlgmr.msra.gmra.mxu0 %vm5237_vm15, %v4750_v58  ;;  %v2656_v1 = vsel %vm5166_vm8, %v4833_v33, %v4776_v13  ;;  %vm5242_vm14 = vnez %v5191_v30  ;;  %vm5243_vm15 = vmmov %vm5239_vm11  ;;  %vm5248_vm8 = vcmask 515072  }
 0x241   : > { %3595 = vmatmul.msk.f32.vlgmr.msra.gmra.mxu1 %vm5238_vm7, %v4796_v28  ;;  %3584 = vmatpush.msk.msrb.mxu0 %vm5239_vm11, %v1897_v27  ;;  %vm5244_vm7 = vmmov %vm5240_vm2  ;;  %vm5245_vm11 = vnez %v5175_v26  ;;  %v2390_v4 = vsel %vm5248_vm8, %v4704_v48, %v4816_v47 }
 0x242   : > { %3599 = vmatmul.msk.f32.vlgmr.msra.gmra.mxu3 %vm5240_vm2, %v4796_v28  ;;  %v2672_v61 = vsel %vm5245_vm11, %v2656_v1, 0.0  ;;  %vm5247_vm5 = vmmov %vm5243_vm15 }
 0x243   : > { %v2383_v59 = vpop.permute.xlu2 %2382  ;;  %v4861_v15 = vpop.permute.xlu0 %2910 }
 0x244   : > { %v2381_v36 = vpop.permute.xlu1 %2380 }
 0x245   : > { %v2393_v54 = vsel %vm5241_vm9, %v2381_v36, %v2383_v59  ;;  %vm5246_vm9 = vmmov %vm5240_vm2 }
 0x246   : > { %v2409_v20 = vsel %vm5242_vm14, %v2393_v54, 0.0  ;;  %vm5252_vm11 = vmmov %vm5246_vm9 }
 0x247   : > { %3620 = vmatpush.msk.msrb.mxu2 %vm5243_vm15, %v2409_v20  ;;  %vm5249_vm15 = vcmask 523264   ;;  %vm5253_vm8 = vmmov %vm5246_vm9 }
 0x248   : > { %3585 = vmatmul.msk.f32.vlgmr.msrb.gmra.mxu0 %vm5244_vm7, %v4750_v58  ;;  %3621 = vmatmul.msk.f32.vlgmr.msrb.gmra.mxu2 %vm5246_vm9, %v4837_v55  ;;  %vm5250_vm7 = vmmov %vm5247_vm5  ;;  %vm5254_vm9 = vcmask 515072  }
 0x249   : > { %3603 = vmatmul.msk.f32.vlgmr.msrb.gmra.mxu1 %vm5240_vm2, %v4796_v28  ;;  %3628 = vmatpush.msk.msra.mxu2 %vm5247_vm5, %v2672_v61  ;;  %vm5251_vm2 = vnez %v5189_v46  ;;  %vm5258_vm14 = vmmov %vm5247_vm5 }
 0x24a   : > { %v2406_v26 = vsel %vm5251_vm2, %v2390_v4, 0.0  ;;  %vm5260_vm2 = vcmask 31744  }
 0x24b   : > { %v4882_v10 = vpop.permute.xlu2 %2649  ;;  %v2144_v42 = vpop.permute.xlu0 %2143 }
 0x24c   : > { %v4884_v17 = vpop.permute.xlu1 %2643  ;;  %v2153_v58 = vsel %vm5249_vm15, %v4787_v43, %v2144_v42  ;;  %vm5255_vm15 = vmmov %vm5254_vm9 }
 0x24d   : > { %3606 = vmatpush.msk.msrb.mxu3 %vm5250_vm7, %v2153_v58  ;;  %v2392_v44 = vsel %vm5255_vm15, %v4814_v22, %v2381_v36  ;;  %vm5256_vm7 = vcmask 523264   ;;  %vm5262_vm15 = vnez %v5195_v6 }
 0x24e   : > { %3607 = vmatmul.msk.f32.vlgmr.msrb.gmra.mxu3 %vm5252_vm11, %v4796_v28  ;;  %vm5257_vm11 = vnez %v5193_v31 }
 0x24f   : > { %3614 = vmatpush.msk.msra.mxu3 %vm5247_vm5, %v2406_v26 }
 0x250   : > { %3629 = vmatmul.msk.f32.vlgmr.msra.gmra.mxu2 %vm5253_vm8, %v4893_v7  ;;  %vm5259_vm8 = vmmov %vm5256_vm7 }
 0x251   : > { %v2150_v52 = vsel %vm5259_vm8, %v4779_v12, %v4741_v14 }
 0x253   : > { %v2371_v48 = vpop.permute.xlu0 %2370 }
 0x254   : > { %v2128_v39 = vpop.permute.xlu1 %2127  ;;  %v2388_v21 = vsel %vm5254_vm9, %v2371_v48, %v4774_v19  ;;  %vm5261_vm9 = vmmov %vm5260_vm2  ;;  %v2408_v19 = vsel %vm5262_vm15, %v2392_v44, 0.0 }
 0x255   : > { %v2646_v43 = vpop.permute.xlu2 %2645  ;;  %v2146_v0 = vsel %vm5256_vm7, %v2128_v39, %v2130_v18  ;;  %v2404_v11 = vsel %vm5257_vm11, %v2388_v21, 0.0  ;;  %vm5263_vm7 = vmmov %vm5247_vm5 }
 0x256   : > { %3592 = vmatpush.msk.msra.mxu0 %vm5258_vm14, %v2146_v0  ;;  %3610 = vmatpush.msk.msra.mxu1 %vm5247_vm5, %v2404_v11  ;;  %vm5264_vm11 = vmmov %vm5260_vm2 }
 0x257   : > { %3593 = vmatmul.msk.f32.vlgmr.msra.gmra.mxu0 %vm5260_vm2, %v4796_v28  ;;  %3615 = vmatmul.msk.f32.vlgmr.msra.gmra.mxu3 %vm5261_vm9, %v4837_v55  ;;  %vm5265_vm14 = vmmov %vm5247_vm5  ;;  %vm5266_vm5 = vcmask 515072   ;;  %vm5267_vm2 = vcmask 269312   ;;  %vm2922_vm9 = vcmask 261120  }
 0x258   : > { %3600 = vmatpush.msk.msrb.mxu0 %vm5263_vm7, %v2150_v52  ;;  %3611 = vmatmul.msk.f32.vlgmr.msra.gmra.mxu1 %vm5264_vm11, %v4837_v55  ;;  %v2657_v12 = vsel %vm5267_vm2, %v4776_v13, %v4884_v17  ;;  %vm5268_vm8 = vmmov %vm5267_vm2 }
 0x259   : > { %3618 = vmatpush.msk.msrb.mxu1 %vm5265_vm14, %v2408_v19  ;;  %vm5269_vm11 = vmmov %vm5263_vm7  ;;  %vm5270_vm7 = vcmask 31744   ;;  %v2673_v13 = vsel %vm4576_vm3, %v2657_v12, 0.0  ;;  %vm5277_vm3 = vcmask 515072   ;;  %v1274_v29 = vpop.f32.mrf.mxu2 }
 0x25a   : > { %vm5271_vm14 = vmmov %vm5269_vm11  ;;  %v2391_v41 = vsel %vm5277_vm3, %v4816_v47, %v4814_v22  ;;  %v4964_v22 = vld [vmem:[#allocation5 + $0x1c] sm:$0xf] }
 0x25b   : > { %v2385_v53 = vpop.permute.xlu0 %2384 }
 0x25c   : > { %v2648_v9 = vpop.permute.xlu1 %2647  ;;  %v2394_v14 = vsel %vm5266_vm5, %v2383_v59, %v2385_v53  ;;  %vm5272_vm5 = vmmov %vm5270_vm7 }
 0x25d   : > { %v4924_v35 = vpop.permute.xlu2 %2908  ;;  %v2660_v16 = vsel %vm5268_vm8, %v2648_v9, %v4882_v10  ;;  %v2410_v8 = vsel %vm4735_vm10, %v2394_v14, 0.0  ;;  %vm5273_vm2 = vmmov %vm5272_vm5 }
 0x25e   : > { %v2676_v5 = vsel %vm4544_vm1, %v2660_v16, 0.0  ;;  %3622 = vmatpush.msk.msrb.mxu3 %vm5269_vm11, %v2410_v8  ;;  %v2925_v45 = vsel %vm2922_vm9, %v4924_v35, %v4861_v15  ;;  %vm5274_vm1 = vmmov %vm5269_vm11  ;;  %v5032_v16 = vld [vmem:[#allocation5 + $0x20] sm:$0xf] }
 0x25f   : > { %3601 = vmatmul.msk.f32.vlgmr.msrb.gmra.mxu0 %vm5270_vm7, %v4796_v28  ;;  %3636 = vmatpush.msk.msrb.mxu2 %vm5271_vm14, %v2676_v5  ;;  %vm5275_vm8 = vmmov %vm5273_vm2  ;;  %vm5279_vm14 = vcmask 269312  }
 0x260   : > { %3619 = vmatmul.msk.f32.vlgmr.msrb.gmra.mxu1 %vm5272_vm5, %v4837_v55  ;;  %3623 = vmatmul.msk.f32.vlgmr.msrb.gmra.mxu3 %vm5273_vm2, %v4837_v55  ;;  %vm5276_vm11 = vmmov %vm5274_vm1  ;;  %vm5281_vm2 = vnez %v5198_v49 }
 0x261   : > { %3630 = vmatpush.msk.msra.mxu3 %vm5274_vm1, %v2673_v13  ;;  %3637 = vmatmul.msk.f32.vlgmr.msrb.gmra.mxu2 %vm5275_vm8, %v4893_v7  ;;  %vm5278_vm7 = vmmov %vm5277_vm3  ;;  %vm5284_vm3 = vcmask 31744  }
 0x262   : > { %3644 = vmatpush.msk.msra.mxu2 %vm5276_vm11, %v2925_v45  ;;  %vm5280_vm5 = vmmov %vm5279_vm14  ;;  %vm5283_vm11 = vnez %v5200_v50 }
 0x263   : > { %v2638_v60 = vpop.permute.xlu0 %2637  ;;  %v2659_v40 = vsel %vm5280_vm5, %v2646_v43, %v2648_v9  ;;  %vm5282_vm8 = vmmov %vm5274_vm1  ;;  %v2407_v47 = vsel %vm5283_vm11, %v2391_v41, 0.0 }
 0x264   : > { %v2369_v28 = vpop.permute.xlu1 %2368  ;;  %v2655_v25 = vsel %vm5279_vm14, %v2638_v60, %v4833_v33  ;;  %v2675_v33 = vsel %vm4538_vm0, %v2659_v40, 0.0  ;;  %vm5286_vm14 = vmmov %vm5274_vm1 }
 0x265   : > { %v2387_v24 = vsel %vm5278_vm7, %v2369_v28, %v2371_v48  ;;  %v4956_v18 = vpop.permute.xlu2 %2918  ;;  %v2671_v51 = vsel %vm4509_vm13, %v2655_v25, 0.0  ;;  %vm5285_vm7 = vmmov %vm5284_vm3 }
 0x266   : > { %v2403_v34 = vsel %vm5281_vm2, %v2387_v24, 0.0  ;;  %3626 = vmatpush.msk.msra.mxu1 %vm5282_vm8, %v2671_v51  ;;  %vm5287_vm13 = vmmov %vm5284_vm3 }
 0x267   : > { %3608 = vmatpush.msk.msra.mxu0 %vm5274_vm1, %v2403_v34  ;;  %vm5288_vm5 = vmmov %vm5274_vm1 }
 0x268   : > { %3609 = vmatmul.msk.f32.vlgmr.msra.gmra.mxu0 %vm5284_vm3, %v4837_v55  ;;  %3627 = vmatmul.msk.f32.vlgmr.msra.gmra.mxu1 %vm5285_vm7, %v4893_v7  ;;  %vm5289_vm1 = vmmov %vm5284_vm3  ;;  %vm5292_vm3 = vcmask 269312  }
 0x269   : > { %3616 = vmatpush.msk.msrb.mxu0 %vm5286_vm14, %v2407_v47  ;;  %3631 = vmatmul.msk.f32.vlgmr.msra.gmra.mxu3 %vm5287_vm13, %v4893_v7  ;;  %vm5290_vm8 = vmmov %vm5289_vm1  ;;  %v2658_v36 = vsel %vm5292_vm3, %v4884_v17, %v2646_v43 }
 0x26a   : > { %3634 = vmatpush.msk.msrb.mxu1 %vm5288_vm5, %v2675_v33  ;;  %3645 = vmatmul.msk.f32.vlgmr.msra.gmra.mxu2 %vm5289_vm1, %v4964_v22  ;;  %vm5291_vm0 = vmmov %vm5289_vm1  ;;  %v2674_v58 = vsel %vm5236_vm6, %v2658_v36, 0.0 }
 0x26b   : > { %v1254_v23 = vpop.f32.mrf.mxu1  ;;  %vm5293_vm7 = vmmov %vm5292_vm3 }
 0x26c   : > { %v1234_v56 = vpop.f32.mrf.mxu0  ;;  %vm5294_vm14 = vmmov %vm5292_vm3  ;;  %vm5300_vm3 = vnez %v5187_v62 }
 0x26d   : > { %v2913_v38 = vpop.permute.xlu1 %2912  ;;  %v2915_v37 = vpop.permute.xlu2 %2914  ;;  %vm5295_vm13 = vmmov %vm5288_vm5 }
 0x26e   : > { %v4980_v57 = vpop.permute.xlu0 %3151  ;;  %vm5296_vm1 = vmmov %vm5291_vm0  ;;  %v2926_v63 = vsel %vm2922_vm9, %v4861_v15, %v2913_v38  ;;  %v2927_v5 = vsel %vm2922_vm9, %v2913_v38, %v2915_v37 }
 0x270   : > { %3617 = vmatmul.msk.f32.vlgmr.msrb.gmra.mxu0 %vm5290_vm8, %v4837_v55  ;;  %3635 = vmatmul.msk.f32.vlgmr.msrb.gmra.mxu1 %vm5291_vm0, %v4893_v7  ;;  %v1294_v55 = vpop.f32.mrf.mxu3  ;;  %vm5297_vm8 = vmmov %vm5288_vm5 }
 0x274   : > { %v1314_v59 = vpop.f32.mrf.mxu0 }
 0x275   : > { %v2636_v27 = vpop.permute.xlu1 %2635  ;;  %v3150_v17 = vpop.permute.xlu2 %3149 }
 0x276   : > { %v2654_v54 = vsel %vm5293_vm7, %v2636_v27, %v2638_v60  ;;  %v2652_v1 = vpop.permute.xlu0 %2651  ;;  %v1334_v20 = vpop.f32.mrf.mxu1 }
 0x277   : > { %v2670_v61 = vsel %vm4460_vm12, %v2654_v54, 0.0  ;;  %v2661_v4 = vsel %vm5294_vm14, %v4882_v10, %v2652_v1  ;;  %vm3163_vm12 = vcmask 252928   ;;  %v3857_v10 = vmov 0   ;;  %vm5302_vm14 = vmmov %vm5291_vm0 }
 0x278   : > { %v2677_v42 = vsel %vm4585_vm4, %v2661_v4, 0.0  ;;  %3624 = vmatpush.msk.msra.mxu0 %vm5295_vm13, %v2670_v61  ;;  %vm5298_vm4 = vmmov %vm5288_vm5  ;;  %3741 = vset.pattern.permute.xlu0 %v3857_v10  ;;  %v3166_v26 = vsel %vm3163_vm12, %v3150_v17, %v4980_v57 }
 0x279   : > { %3638 = vmatpush.msk.msrb.mxu3 %vm5288_vm5, %v2677_v42  ;;  %3625 = vmatmul.msk.f32.vlgmr.msra.gmra.mxu0 %vm5296_vm1, %v4893_v7  ;;  %vm5299_vm6 = vmmov %vm5298_vm4  ;;  %v3182_v52 = vsel %vm5300_vm3, %v3166_v26, 0.0 }
 0x27a   : > { %3632 = vmatpush.msk.msrb.mxu0 %vm5297_vm8, %v2674_v58  ;;  %3639 = vmatmul.msk.f32.vlgmr.msrb.gmra.mxu3 %vm5291_vm0, %v4893_v7  ;;  %v1354_v2 = vpop.f32.mrf.mxu2  ;;  %vm5301_vm7 = vmmov %vm5298_vm4 }
 0x27b   : > { %3646 = vmatpush.msk.msra.mxu3 %vm5298_vm4, %v2926_v63  ;;  %3388 = vperm.xlu0 %3741, %v3385_v32   ;;  %vm5303_vm13 = vmmov %vm5291_vm0 }
 0x27c   : > { %vm5304_vm5 = vmmov %vm5298_vm4 }
 0x27d   : > { %v2917_v15 = vpop.permute.xlu1 %2916  ;;  %v1421_v11 = vpop.f32.mrf.mxu0  ;;  %vm5305_vm1 = vmmov %vm5298_vm4 }
 0x27e   : > { %v2929_v48 = vsel %vm2922_vm9, %v2917_v15, %v4956_v18  ;;  %v2907_v39 = vpop.permute.xlu0 %2906  ;;  %v1441_v21 = vpop.f32.mrf.mxu1  ;;  %v2928_v44 = vsel %vm2922_vm9, %v2915_v37, %v2917_v15  ;;  %v1422_v19 = vadd.f32 %v1421_v11, %v1234_v56  ;;  %vm5306_vm8 = vmmov %vm5291_vm0 }
 0x27f   : > { %v2924_v43 = vsel %vm2922_vm9, %v2907_v39, %v4924_v35  ;;  %3652 = vmatpush.msk.msrb.mxu2 %vm5299_vm6, %v2929_v48  ;;  %v1442_v0 = vadd.f32 %v1441_v21, %v1254_v23  ;;  %vm5307_vm4 = vmmov %vm5305_vm1  ;;  %v3160_v41 = vpop.permute.xlu2 %3159 }
 0x280   : > { %3642 = vmatpush.msk.msra.mxu1 %vm5301_vm7, %v2924_v43  ;;  %3653 = vmatmul.msk.f32.vlgmr.msrb.gmra.mxu2 %vm5302_vm14, %v4964_v22  ;;  %vm5308_vm6 = vmmov %vm5305_vm1 }
 0x281   : > { %3643 = vmatmul.msk.f32.vlgmr.msra.gmra.mxu1 %vm5303_vm13, %v4964_v22  ;;  %3660 = vmatpush.msk.msra.mxu2 %vm5304_vm5, %v3182_v52  ;;  %v1374_v53 = vpop.f32.mrf.mxu3  ;;  %vm5309_vm3 = vmmov %vm5305_vm1  ;;  %vm5314_vm5 = vnez %v5189_v46 }
 0x282   : > { %3650 = vmatpush.msk.msrb.mxu1 %vm5305_vm1, %v2928_v44  ;;  %3633 = vmatmul.msk.f32.vlgmr.msrb.gmra.mxu0 %vm5306_vm8, %v4893_v7  ;;  %v1461_v9 = vpop.f32.mrf.mxu2  ;;  %vm5310_vm7 = vmmov %vm5291_vm0  ;;  %vm5315_vm1 = vnez %v5193_v31 }
 0x283   : > { %3647 = vmatmul.msk.f32.vlgmr.msra.gmra.mxu3 %vm5291_vm0, %v4964_v22  ;;  %v1462_v62 = vadd.f32 %v1461_v9, %v1274_v29  ;;  %vm5311_vm14 = vmmov %vm5291_vm0 }
 0x284   : > { %vm5312_vm13 = vmmov %vm5291_vm0 }
 0x285   : > { %v2905_v14 = vpop.permute.xlu1 %2904  ;;  %v1501_v45 = vpop.f32.mrf.mxu0  ;;  %vm5316_vm8 = vmmov %vm5309_vm3 }
 0x286   : > { %v2923_v12 = vsel %vm2922_vm9, %v2905_v14, %v2907_v39  ;;  %v2921_v35 = vpop.permute.xlu0 %2920  ;;  %v1521_v8 = vpop.f32.mrf.mxu1  ;;  %v1502_v28 = vadd.f32 %v1501_v45, %v1314_v59 }
 0x287   : > { %v2930_v13 = vsel %vm2922_vm9, %v4956_v18, %v2921_v35  ;;  %3640 = vmatpush.msk.msra.mxu0 %vm5307_vm4, %v2923_v12  ;;  %v1522_v7 = vadd.f32 %v1521_v8, %v1334_v20  ;;  %vm5313_vm9 = vmmov %vm5291_vm0  ;;  %v3156_v27 = vpop.permute.xlu2 %3155 }
 0x288   : > { %3654 = vmatpush.msk.msrb.mxu3 %vm5308_vm6, %v2930_v13  ;;  %3661 = vmatmul.msk.f32.vlgmr.msra.gmra.mxu2 %vm5311_vm14, %v5032_v16  ;;  %vm5317_vm0 = vmmov %vm5309_vm3 }
 0x289   : > { %3648 = vmatpush.msk.msrb.mxu0 %vm5309_vm3, %v2927_v5  ;;  %3651 = vmatmul.msk.f32.vlgmr.msrb.gmra.mxu1 %vm5310_vm7, %v4964_v22  ;;  %v1481_v60 = vpop.f32.mrf.mxu3  ;;  %vm5318_vm4 = vmmov %vm5310_vm7 }
 0x28a   : > { %3641 = vmatmul.msk.f32.vlgmr.msra.gmra.mxu0 %vm5312_vm13, %v4964_v22  ;;  %v1541_v24 = vpop.f32.mrf.mxu2  ;;  %v1482_v25 = vadd.f32 %v1481_v60, %v1294_v55  ;;  %vm5319_vm6 = vmmov %vm5318_vm4 }
 0x28b   : > { %3655 = vmatmul.msk.f32.vlgmr.msrb.gmra.mxu3 %vm5313_vm9, %v4964_v22  ;;  %v1542_v40 = vadd.f32 %v1541_v24, %v1354_v2  ;;  %vm5320_vm3 = vmmov %vm5318_vm4 }
 0x28c   : > { %vm5321_vm7 = vmmov %vm5317_vm0 }
 0x28d   : > { %v3154_v18 = vpop.permute.xlu1 %3153  ;;  %vm5322_vm14 = vmmov %vm5317_vm0 }
 0x28e   : > { %v3167_v34 = vsel %vm3163_vm12, %v4980_v57, %v3154_v18  ;;  %v3148_v51 = vpop.permute.xlu0 %3147  ;;  %v1700_v47 = vpop.f32.mrf.mxu1  ;;  %v3168_v31 = vsel %vm3163_vm12, %v3154_v18, %v3156_v27  ;;  %vm5323_vm13 = vmmov %vm5317_vm0 }
 0x28f   : > { %v3183_v33 = vsel %vm5314_vm5, %v3167_v34, 0.0  ;;  %v3165_v23 = vsel %vm3163_vm12, %v3148_v51, %v3150_v17  ;;  %v1824_v56 = vadd.f32 %v1700_v47, %v1442_v0  ;;  %v3184_v55 = vsel %vm5283_vm11, %v3168_v31, 0.0  ;;  %vm5327_vm11 = vmmov %vm5317_vm0 }
 0x290   : > { %v3181_v38 = vsel %vm5315_vm1, %v3165_v23, 0.0  ;;  %3662 = vmatpush.msk.msra.mxu3 %vm5316_vm8, %v3183_v33  ;;  %vm5328_vm5 = vmmov %vm5317_vm0 }
 0x291   : > { %3658 = vmatpush.msk.msra.mxu1 %vm5317_vm0, %v3181_v38  ;;  %v1561_v37 = vpop.f32.mrf.mxu3 }
 0x292   : > { %3649 = vmatmul.msk.f32.vlgmr.msrb.gmra.mxu0 %vm5318_vm4, %v4964_v22  ;;  %3659 = vmatmul.msk.f32.vlgmr.msra.gmra.mxu1 %vm5319_vm6, %v5032_v16  ;;  %v1720_v57 = vpop.f32.mrf.mxu2  ;;  %v1562_v46 = vadd.f32 %v1561_v37, %v1374_v53  ;;  %vm5333_vm4 = vmmov %vm5317_vm0 }
 0x293   : > { %3663 = vmatmul.msk.f32.vlgmr.msra.gmra.mxu3 %vm5320_vm3, %v5032_v16  ;;  %v1825_v29 = vadd.f32 %v1720_v57, %v1462_v62  ;;  %vm5334_vm6 = vmmov %vm5317_vm0 }
 0x295   : > { %v3146_v59 = vpop.permute.xlu1 %3145  ;;  %v1680_v1 = vpop.f32.mrf.mxu0 }
 0x296   : > { %v3164_v36 = vsel %vm3163_vm12, %v3146_v59, %v3148_v51  ;;  %v3162_v54 = vpop.permute.xlu0 %3161  ;;  %v1823_v61 = vadd.f32 %v1680_v1, %v1422_v19  ;;  %v1780_v4 = vpop.f32.mrf.mxu1 }
 0x297   : > { %v3180_v22 = vsel %vm5281_vm2, %v3164_v36, 0.0  ;;  %v3171_v20 = vsel %vm3163_vm12, %v3160_v41, %v3162_v54  ;;  %v1828_v58 = vadd.f32 %v1780_v4, %v1522_v7  ;;  %vm5324_vm2 = vmmov %vm5320_vm3 }
 0x298   : > { %v3187_v42 = vsel %vm4735_vm10, %v3171_v20, 0.0  ;;  %3656 = vmatpush.msk.msra.mxu0 %vm5321_vm7, %v3180_v22  ;;  %vm5325_vm9 = vmmov %vm5324_vm2  ;;  %vm5326_vm10 = vnez %v5191_v30 }
 0x299   : > { %3670 = vmatpush.msk.msrb.mxu3 %vm5322_vm14, %v3187_v42  ;;  %v1740_v63 = vpop.f32.mrf.mxu3  ;;  %vm5329_vm1 = vmmov %vm5324_vm2 }
 0x29a   : > { %3664 = vmatpush.msk.msrb.mxu0 %vm5323_vm13, %v3184_v55  ;;  %v1800_v49 = vpop.f32.mrf.mxu2  ;;  %v1826_v17 = vadd.f32 %v1740_v63, %v1482_v25  ;;  %vm5330_vm8 = vmmov %vm5329_vm1 }
 0x29b   : > { %3657 = vmatmul.msk.f32.vlgmr.msra.gmra.mxu0 %vm5324_vm2, %v5032_v16  ;;  %3671 = vmatmul.msk.f32.vlgmr.msrb.gmra.mxu3 %vm5325_vm9, %v5032_v16  ;;  %v1829_v50 = vadd.f32 %v1800_v49, %v1542_v40 }
 0x29d   : > { %v3158_v2 = vpop.permute.xlu1 %3157 }
 0x29e   : > { %v3169_v3 = vsel %vm3163_vm12, %v3156_v27, %v3158_v2  ;;  %v3170_v32 = vsel %vm3163_vm12, %v3158_v2, %v3160_v41  ;;  %v1760_v10 = vpop.f32.mrf.mxu0  ;;  %vm5331_vm12 = vmmov %vm5329_vm1 }
 0x29f   : > { %v3185_v26 = vsel %vm5262_vm15, %v3169_v3, 0.0  ;;  %v3186_v15 = vsel %vm5326_vm10, %v3170_v32, 0.0  ;;  %v1827_v48 = vadd.f32 %v1760_v10, %v1502_v28  ;;  %vm5332_vm15 = vmmov %vm5317_vm0 }
 0x2a0   : > { %3666 = vmatpush.msk.msrb.mxu1 %vm5327_vm11, %v3185_v26  ;;  %3668 = vmatpush.msk.msrb.mxu2 %vm5328_vm5, %v3186_v15 }
 0x2a1   : > { %3667 = vmatmul.msk.f32.vlgmr.msrb.gmra.mxu1 %vm5329_vm1, %v5032_v16  ;;  %3669 = vmatmul.msk.f32.vlgmr.msrb.gmra.mxu2 %vm5330_vm8, %v5032_v16 }
 0x2a2   : > { %v1987_v39 = vpop.f32.mrf.mxu2  ;;  %v1820_v6 = vpop.f32.mrf.mxu3 }
 0x2a3   : > { %3665 = vmatmul.msk.f32.vlgmr.msrb.gmra.mxu0 %vm5331_vm12, %v5032_v16  ;;  %v2092_v21 = vadd.f32 %v1987_v39, %v1825_v29  ;;  %v1830_v44 = vadd.f32 %v1820_v6, %v1562_v46 }
 0x2aa   : > { %v2067_v30 = vpop.f32.mrf.mxu2  ;;  %v2007_v43 = vpop.f32.mrf.mxu3 }
 0x2ab   : > { %v5093_v0 = vadd.f32 %v2067_v30, %v1829_v50  ;;  %v2093_v11 = vadd.f32 %v2007_v43, %v1826_v17 }
 0x2ac   : > { %v1967_v52 = vpop.f32.mrf.mxu1 }
 0x2ad   : > { %v2091_v19 = vadd.f32 %v1967_v52, %v1824_v56 }
 0x2b2   : > { %v2230_v13 = vpop.f32.mrf.mxu2 }
 0x2b4   : > { %v2047_v53 = vpop.f32.mrf.mxu1 }
 0x2b5   : > { %v5095_v9 = vadd.f32 %v2047_v53, %v1828_v58  ;;  %v2335_v58 = vadd.f32 %v2230_v13, %v2092_v21 }
 0x2ba   : > { %v5097_v28 = vpop.f32.mrf.mxu2 }
 0x2bb   : > { %v2087_v62 = vpop.f32.mrf.mxu3 }
 0x2bc   : > { %v2097_v14 = vadd.f32 %v2087_v62, %v1830_v44 }
 0x2bd   : > { %v1947_v12 = vpop.f32.mrf.mxu0 }
 0x2be   : > { %v2090_v35 = vadd.f32 %v1947_v12, %v1823_v61  ;;  %v2210_v16 = vpop.f32.mrf.mxu1 }
 0x2bf   : > { %v2334_v20 = vadd.f32 %v2210_v16, %v2091_v19 }
 0x2c3   : > { %v2497_v25 = vpop.f32.mrf.mxu2 }
 0x2c4   : > { %v2602_v3 = vadd.f32 %v2497_v25, %v2335_v58 }
 0x2c5   : > { %v2027_v8 = vpop.f32.mrf.mxu0  ;;  %v2250_v7 = vpop.f32.mrf.mxu3 }
 0x2c6   : > { %v2094_v5 = vadd.f32 %v2027_v8, %v1827_v48  ;;  %v2290_v45 = vpop.f32.mrf.mxu1  ;;  %v2336_v63 = vadd.f32 %v2250_v7, %v2093_v11 }
 0x2c7   : > { %v2338_v19 = vadd.f32 %v2290_v45, %v5095_v9 }
 0x2cb   : > { %v5099_v47 = vpop.f32.mrf.mxu2 }
 0x2d1   : > { %v2330_v41 = vpop.f32.mrf.mxu3 }
 0x2d2   : > { %v2340_v53 = vadd.f32 %v2330_v41, %v2097_v14 }
 0x2d3   : > { %v2764_v38 = vpop.f32.mrf.mxu2 }
 0x2d4   : > { %v2190_v60 = vpop.f32.mrf.mxu0  ;;  %v2869_v15 = vadd.f32 %v2764_v38, %v2602_v3 }
 0x2d5   : > { %v2477_v24 = vpop.f32.mrf.mxu1  ;;  %v2333_v50 = vadd.f32 %v2190_v60, %v2090_v35 }
 0x2d6   : > { %v2601_v4 = vadd.f32 %v2477_v24, %v2334_v20 }
 0x2da   : > { %v2517_v18 = vpop.f32.mrf.mxu3 }
 0x2db   : > { %v2603_v32 = vadd.f32 %v2517_v18, %v2336_v63 }
 0x2dc   : > { %v2270_v40 = vpop.f32.mrf.mxu0 }
 0x2dd   : > { %v2557_v34 = vpop.f32.mrf.mxu1  ;;  %v2337_v8 = vadd.f32 %v2270_v40, %v2094_v5  ;;  %v2339_v40 = vadd.f32 %v5097_v28, %v5093_v0 }
 0x2de   : > { %v2605_v13 = vadd.f32 %v2557_v34, %v2338_v19 }
 0x2e3   : > { %v2597_v33 = vpop.f32.mrf.mxu3 }
 0x2e4   : > { %v5101_v29 = vpop.f32.mrf.mxu2  ;;  %v2607_v7 = vadd.f32 %v2597_v33, %v2340_v53 }
 0x2e5   : > { %v2457_v51 = vpop.f32.mrf.mxu0  ;;  %v2744_v23 = vpop.f32.mrf.mxu1 }
 0x2e6   : > { %v2868_v55 = vadd.f32 %v2744_v23, %v2601_v4  ;;  %v2600_v10 = vadd.f32 %v2457_v51, %v2333_v50 }
 0x2ec   : > { %v2784_v37 = vpop.f32.mrf.mxu3 }
 0x2ed   : > { %v2537_v56 = vpop.f32.mrf.mxu0  ;;  %v2824_v57 = vpop.f32.mrf.mxu1  ;;  %v2870_v48 = vadd.f32 %v2784_v37, %v2603_v32 }
 0x2ee   : > { %v3007_v36 = vpop.f32.mrf.mxu2  ;;  %v3389_v43 = vpop.permute.xlu0 %3388  ;;  %v2604_v24 = vadd.f32 %v2537_v56, %v2337_v8  ;;  %v2872_v14 = vadd.f32 %v2824_v57, %v2605_v13  ;;  %v2606_v57 = vadd.f32 %v5099_v47, %v2339_v40 }
 0x2ef   : > { %v3112_v44 = vadd.f32 %v3007_v36, %v2869_v15 }
 0x2f0   : > { %v2873_v36 = vadd.f32 %v5101_v29, %v2606_v57 }
 0x2f6   : > { %v2724_v46 = vpop.f32.mrf.mxu0 }
 0x2f7   : > { %v2867_v39 = vadd.f32 %v2724_v46, %v2600_v10 }
 0x2fd   : > { %v2864_v27 = vpop.f32.mrf.mxu3 }
 0x2fe   : > { %v2987_v31 = vpop.f32.mrf.mxu1  ;;  %v2874_v45 = vadd.f32 %v2864_v27, %v2607_v7 }
 0x2ff   : > { %v2804_v59 = vpop.f32.mrf.mxu0  ;;  %v3111_v2 = vadd.f32 %v2987_v31, %v2868_v55 }
 0x300   : > { %v2871_v51 = vadd.f32 %v2804_v59, %v2604_v24 }
 0x303   : > { %v5103_v61 = vpop.f32.mrf.mxu2 }
 0x304   : > { %v3116_v28 = vadd.f32 %v5103_v61, %v2873_v36 }
 0x306   : > { %v3027_v54 = vpop.f32.mrf.mxu3  ;;  %v3067_v1 = vpop.f32.mrf.mxu1 }
 0x307   : > { %v2967_v22 = vpop.f32.mrf.mxu0  ;;  %v3113_v30 = vadd.f32 %v3027_v54, %v2870_v48  ;;  %v3115_v34 = vadd.f32 %v3067_v1, %v2872_v14 }
 0x308   : > { %v3110_v52 = vadd.f32 %v2967_v22, %v2867_v39 }
 0x30b   : > { %v3274_v6 = vpop.f32.mrf.mxu2 }
 0x30c   : > { %v3379_v62 = vadd.f32 %v3274_v6, %v3112_v44 }
 0x30e   : > { %v3107_v42 = vpop.f32.mrf.mxu3  ;;  %v3393_v41 = vadd.f32 %v3389_v43, %v3379_v62 }
 0x30f   : > { %v3047_v49 = vpop.f32.mrf.mxu0  ;;  %v3254_v17 = vpop.f32.mrf.mxu1  ;;  %v3117_v33 = vadd.f32 %v3107_v42, %v2874_v45 }
 0x310   : > { %v3378_v26 = vadd.f32 %v3254_v17, %v3111_v2  ;;  %v3114_v56 = vadd.f32 %v3047_v49, %v2871_v51 }
 0x312   : > { %v3392_v21 = vadd.f32 %v3389_v43, %v3378_v26 }
 0x314   : > { %v3407_v25 = vrot.slane %v3392_v21, 4 }
 0x316   : > { %v3294_v11 = vpop.f32.mrf.mxu3 }
 0x317   : > { %v3380_v12 = vadd.f32 %v3294_v11, %v3113_v30 }
 0x318   : > { %v3234_v35 = vpop.f32.mrf.mxu0 }
 0x319   : > { %v3377_v16 = vadd.f32 %v3234_v35, %v3110_v52  ;;  %v3394_v60 = vadd.f32 %v3389_v43, %v3380_v12 }
 0x31b   : > { %v3391_v9 = vadd.f32 %v3389_v43, %v3377_v16  ;;  %v3408_v18 = vrot.slane %v3394_v60, 4 }
 0x31d   : > { %v3411_v5 = vsel %vm5332_vm15, %v3391_v9, %v3407_v25  ;;  %v3412_v23 = vsel %vm5317_vm0, %v3393_v41, %v3408_v18 }
 0x31e   : > { %3419 = vst [vmem:[%s5111_s9] sm:$0xff] %v3411_v5  ;;  %v3374_v38 = vpop.f32.mrf.mxu3  ;;  %v3334_v37 = vpop.f32.mrf.mxu1 }
 0x31f   : > { %3420 = vst [vmem:[%s5111_s9 + $0x8] sm:$0xff] %v3412_v23  ;;  %v3384_v46 = vadd.f32 %v3374_v38, %v3117_v33  ;;  %v3382_v31 = vadd.f32 %v3334_v37, %v3115_v34 }
 0x320   : > { %v3314_v27 = vpop.f32.mrf.mxu0 }
 0x321   : > { %v3381_v59 = vadd.f32 %v3314_v27, %v3114_v56  ;;  %v3396_v0 = vadd.f32 %v3389_v43, %v3382_v31  ;;  %v3398_v54 = vadd.f32 %v3389_v43, %v3384_v46 }
 0x323   : > { %v3395_v1 = vadd.f32 %v3389_v43, %v3381_v59  ;;  %v3409_v22 = vrot.slane %v3396_v0, 4  ;;  %v3410_v42 = vrot.slane %v3398_v54, 4 }
 0x324   : > { %v3354_v20 = vpop.f32.mrf.mxu2 }
 0x325   : > { %v3413_v4 = vsel %vm5333_vm4, %v3395_v1, %v3409_v22  ;;  %v3383_v55 = vadd.f32 %v3354_v20, %v3116_v28 }
 0x326   : > { %3421 = vst [vmem:[%s5111_s9 + $0x10] sm:$0xff] %v3413_v4 }
 0x327   : > { %v3397_v47 = vadd.f32 %v3389_v43, %v3383_v55 }
 0x329   : > { %v3414_v58 = vsel %vm5334_vm6, %v3397_v47, %v3410_v42 }
 0x32a   : > { %3422 = vst [vmem:[%s5111_s9 + $0x18] sm:$0xff] %v3414_v58 }
 0x32b PF: > { %p15_p4 = scmp.ge.s32.totalorder %s3926_s27, 4   ;;  %s5335_s15 = smov %s3832_s16 }
 0x32c   : > { %s5336_s16 = smov %s3836_s17  ;;  %s5337_s17 = smov %s3936_s6 }
 0x32d   : > { %s5338_s18 = smov %s3926_s27  ;;  %17 = sbr.rel (!%p15_p4) target bundleno = 4 (0x4), region = 115 }
 0x332   :  { %3444 = vsyncpa [#allocation4], 1 }
 0x333   :  { %3446 = vsyncpa [#allocation4 + $0x1], 1 }
 0x334   :  { %3447 = vsyncpa [#allocation6], 1 }

</bundles_post_ra>
